<compile_context>
chip_gen: v5e
topology: v5e:2x2
jax: 0.10.0
libtpu: 0.0.40
codegen_flags: <defaults>
</compile_context>

<pallas_src>
import functools
import math

import jax
import jax.numpy as jnp
from jax.experimental import pallas as pl
from jax.experimental.pallas import tpu as pltpu


def _round_up(x, m):
    return ((x + m - 1) // m) * m


def _tpu_config():
    """(matmul tile width, vmem_limit_bytes) chosen per TPU generation."""
    try:
        kind = jax.devices()[0].device_kind.lower()
    except Exception:
        kind = ""
    if "v5" in kind:                      # v5e/v5p: 128x128 MXU, 128 MiB VMEM
        return 128, 64 * 1024 * 1024
    if "v7" in kind:                      # v7x: 256-wide MXU, only 64 MiB VMEM
        return 256, 36 * 1024 * 1024
    return 256, 64 * 1024 * 1024          # v6e and default


_TILE, _VMEM_LIMIT = _tpu_config()


# --------------------------------------------------------------------------
# Pallas kernels
# --------------------------------------------------------------------------

def _matmul_kernel(*refs, act, has_res):
    """o = act(x @ w + b [+ res]); bf16 operands, f32 accumulation, 1 K-block."""
    if has_res:
        x_ref, w_ref, b_ref, r_ref, o_ref = refs
    else:
        x_ref, w_ref, b_ref, o_ref = refs
        r_ref = None
    y = jnp.dot(x_ref[...], w_ref[...], preferred_element_type=jnp.float32)
    y = y + b_ref[...]
    if has_res:
        y = y + r_ref[...].astype(jnp.float32)
    if act:
        y = jnp.maximum(y, 0.0)
    o_ref[...] = y.astype(o_ref.dtype)


def matmul_bias_act(x, w, b, act, residual=None, n_out=None,
                    out_dtype=jnp.bfloat16):
    """y = act(x @ w + b [+ residual]).

    x: (M, K) float (cast to bf16 here); w: (Kp, Np) bf16, K pre-padded to a
    multiple of 128; b: (1, Np) f32; residual: optional, fused in the epilogue.
    All K in this network are <= 4608 so a single full-K block per tile fits
    VMEM comfortably -> no K grid axis / accumulator scratch required.
    """
    M, K = x.shape
    Kp, Np = w.shape
    n_out = Np if n_out is None else n_out

    TM = _TILE if M >= _TILE else _round_up(M, 16)       # 16: bf16 sublane pack
    # >=2 N tiles whenever possible (keeps both v7x TensorCores busy).
    TN = _TILE if (Np % _TILE == 0 and Np >= 2 * _TILE) else 128
    Mp = _round_up(M, TM)

    xp = x.astype(jnp.bfloat16)
    if Mp != M or Kp != K:
        xp = jnp.pad(xp, ((0, Mp - M), (0, Kp - K)))

    inputs = [xp, w, b]
    in_specs = [
        pl.BlockSpec((TM, Kp), lambda i, j: (i, 0)),
        pl.BlockSpec((Kp, TN), lambda i, j: (0, j)),
        pl.BlockSpec((1, TN), lambda i, j: (0, j)),
    ]
    if residual is not None:
        r = residual.astype(jnp.bfloat16)
        if r.shape != (Mp, Np):
            r = jnp.pad(r, ((0, Mp - r.shape[0]), (0, Np - r.shape[1])))
        inputs.append(r)
        in_specs.append(pl.BlockSpec((TM, TN), lambda i, j: (i, j)))

    out = pl.pallas_call(
        functools.partial(_matmul_kernel, act=act, has_res=residual is not None),
        out_shape=jax.ShapeDtypeStruct((Mp, Np), out_dtype),
        grid_spec=pltpu.PrefetchScalarGridSpec(
            num_scalar_prefetch=0,
            grid=(Mp // TM, Np // TN),
            in_specs=in_specs,
            out_specs=pl.BlockSpec((TM, TN), lambda i, j: (i, j)),
        ),
        compiler_params=pltpu.CompilerParams(
            dimension_semantics=("parallel", "parallel"),
            vmem_limit_bytes=_VMEM_LIMIT),
        cost_estimate=pl.CostEstimate(
            flops=2 * Mp * Np * Kp,
            transcendentals=0,
            bytes_accessed=2 * (Mp * Kp + Kp * Np + Mp * Np)),
    )(*inputs)
    return out[:M, :n_out]


def _conv_s1_kernel(xf_hbm, w_ref, b_ref, o_ref, slab_buf, sem, lhs_ref,
                    *, tm, slab_rows, cin_p, offs, act):
    """Fused stride-1 KxK conv tile.

    One (slab_rows, cin_p) slab of the flattened padded input is DMA'd from
    HBM per M tile (double-buffered, prefetched one grid step ahead).  The
    kh*kw taps are static sublane-shifted slices of that slab, packed into a
    (tm, kh*kw*cin_p) VMEM im2col block and reduced with a single MXU dot.
    """
    i = pl.program_id(0)
    nm = pl.num_programs(0)
    slot = jax.lax.rem(i, 2)

    def fetch(step, to_slot):
        pltpu.make_async_copy(
            xf_hbm.at[pl.ds(step * tm, slab_rows)],
            slab_buf.at[to_slot],
            sem.at[to_slot]).start()

    @pl.when(i == 0)                       # prime the pipeline
    def _():
        fetch(0, 0)

    @pl.when(i + 1 < nm)                   # prefetch next tile's slab
    def _():
        fetch(i + 1, 1 - slot)

    pltpu.make_async_copy(                 # wait for the current slab
        xf_hbm.at[pl.ds(0, slab_rows)], slab_buf.at[slot], sem.at[slot]).wait()

    slab = slab_buf[slot]                                  # (slab_rows, cin_p)
    for t, off in enumerate(offs):                         # static, unrolled
        lhs_ref[:, t * cin_p:(t + 1) * cin_p] = slab[off:off + tm, :]

    y = jnp.dot(lhs_ref[...], w_ref[...], preferred_element_type=jnp.float32)
    y = y + b_ref[...]
    if act:
        y = jnp.maximum(y, 0.0)
    o_ref[...] = y.astype(o_ref.dtype)


def conv3x3_s1(x, p, act=True):
    """Stride-1 kxk conv + folded BN (+ReLU) without HBM im2col.

    Shifted-flat-matmul identity: with the input zero-padded spatially and
    flattened to Xf (B*Hp*Wp, Cin_p), the conv output at flat row m is
    sum_t Xf[m + dh*Wp + dw] @ W[dh, dw]; rows computed at invalid padded
    positions are discarded by the final slice.
    """
    kh, kw, cin, cout, cin_p = p['kh'], p['kw'], p['cin'], p['cout'], p['cin_p']
    pad = (kh - 1) // 2
    B, H, W, C = x.shape
    assert C == cin
    Hp, Wp = H + 2 * pad, W + 2 * pad
    Ho, Wo = Hp - kh + 1, Wp - kw + 1

    # spatial zero pad + channel pad to the lane-aligned cin_p, then flatten
    xp = jnp.pad(x.astype(jnp.bfloat16),
                 ((0, 0), (pad, pad), (pad, pad), (0, cin_p - cin)))
    Mtrue = B * Hp * Wp
    TM = _TILE if Mtrue >= _TILE else _round_up(Mtrue, 16)
    Mp = _round_up(Mtrue, TM)

    offs = tuple(dh * Wp + dw for dh in range(kh) for dw in range(kw))
    max_off = offs[-1]
    slab_rows = TM + _round_up(max_off, 16)       # halo keeps all taps in-slab
    pad_tail = slab_rows - TM                     # keeps the last DMA in-bounds
    xf = jnp.pad(xp.reshape(Mtrue, cin_p), ((0, Mp - Mtrue + pad_tail), (0, 0)))

    wmat, bias = p['w'], p['b']
    Ktot, Np = wmat.shape
    assert Ktot == kh * kw * cin_p

    out = pl.pallas_call(
        functools.partial(_conv_s1_kernel, tm=TM, slab_rows=slab_rows,
                          cin_p=cin_p, offs=offs, act=act),
        out_shape=jax.ShapeDtypeStruct((Mp, Np), jnp.bfloat16),
        grid_spec=pltpu.PrefetchScalarGridSpec(
            num_scalar_prefetch=0,
            grid=(Mp // TM,),
            in_specs=[
                pl.BlockSpec(memory_space=pl.ANY),          # Xf stays in HBM
                pl.BlockSpec((Ktot, Np), lambda i: (0, 0)),  # full weight resident
                pl.BlockSpec((1, Np), lambda i: (0, 0)),
            ],
            out_specs=pl.BlockSpec((TM, Np), lambda i: (i, 0)),
            scratch_shapes=[
                pltpu.VMEM((2, slab_rows, cin_p), jnp.bfloat16),  # slab dbl-buf
                pltpu.SemaphoreType.DMA((2,)),
                pltpu.VMEM((TM, kh * kw * cin_p), jnp.bfloat16),  # VMEM im2col
            ],
        ),
        compiler_params=pltpu.CompilerParams(
            # must stay sequential: tile i issues the slab DMA for tile i+1
            dimension_semantics=("arbitrary",),
            vmem_limit_bytes=_VMEM_LIMIT),
        cost_estimate=pl.CostEstimate(
            flops=2 * Mp * Np * kh * kw * cin_p,
            transcendentals=0,
            bytes_accessed=2 * (Mp * cin_p + kh * kw * cin_p * Np + Mp * Np)),
    )(xf, wmat, bias)

    y = out[:Mtrue, :cout].reshape(B, Hp, Wp, cout)
    return y[:, :Ho, :Wo, :]


# --------------------------------------------------------------------------
# Plain-JAX glue around the Pallas hot path
# --------------------------------------------------------------------------

def conv_im2col(x, p, stride, pad, act):
    """KxK conv via bf16 im2col + the tiled matmul kernel.  Only used for the
    few stride-2 convs (7x7 stem and the three down-sampling 3x3 convs)."""
    kh, kw, cout = p['kh'], p['kw'], p['cout']
    x = x.astype(jnp.bfloat16)
    B, H, W, C = x.shape
    xp = jnp.pad(x, ((0, 0), (pad, pad), (pad, pad), (0, 0)))
    Ho = (H + 2 * pad - kh) // stride + 1
    Wo = (W + 2 * pad - kw) // stride + 1
    patches = [xp[:, i:i + stride * Ho:stride, j:j + stride * Wo:stride, :]
               for i in range(kh) for j in range(kw)]
    cols = jnp.stack(patches, axis=3).reshape(B * Ho * Wo, kh * kw * C)
    y = matmul_bias_act(cols, p['w'], p['b'], act, n_out=cout)
    return y.reshape(B, Ho, Wo, cout)


def conv1x1(x, p, stride=1, act=True, residual=None):
    """1x1 conv (+folded BN) as a plain tiled matmul; optional fused
    residual-add + ReLU in the epilogue (used for the c3 conv)."""
    if stride != 1:
        x = x[:, ::stride, ::stride, :]
    B, H, W, C = x.shape
    res2d = None
    if residual is not None:
        res2d = residual.reshape(B * H * W, residual.shape[-1])
    y = matmul_bias_act(x.reshape(B * H * W, C), p['w'], p['b'], act,
                        residual=res2d, n_out=p['cout'])
    return y.reshape(B, H, W, p['cout'])


def maxpool_3x3_s2(x):
    """3x3/s2 maxpool (stem): running max over the 9 strided views; no (M,9,C)
    stacking / HBM inflation.  Left to XLA -- it is a single cheap pass."""
    B, H, W, C = x.shape
    pad = 1
    xp = jnp.pad(x, ((0, 0), (pad, pad), (pad, pad), (0, 0)),
                 constant_values=-1e30)
    Ho = (H + 2 * pad - 3) // 2 + 1
    Wo = (W + 2 * pad - 3) // 2 + 1
    out = None
    for dh in range(3):
        for dw in range(3):
            v = xp[:, dh:dh + 2 * Ho - 1:2, dw:dw + 2 * Wo - 1:2, :]
            out = v if out is None else jnp.maximum(out, v)
    return out


def bottleneck(x, blk, stride):
    if 'ds' in blk:
        identity = conv1x1(x, blk['ds'], stride=stride, act=False)
    else:
        identity = x
    out = conv1x1(x, blk['c1'], act=True)
    if stride == 1:
        out = conv3x3_s1(out, blk['c2'], act=True)
    else:
        out = conv_im2col(out, blk['c2'], stride=stride, pad=1, act=True)
    # residual add + final ReLU are fused into the c3 matmul epilogue
    return conv1x1(out, blk['c3'], act=True, residual=identity)


def encoder_forward(params, x_nchw):
    x = jnp.transpose(x_nchw, (0, 2, 3, 1)).astype(jnp.bfloat16)    # NCHW->NHWC
    x = conv_im2col(x, params['stem'], stride=2, pad=3, act=True)   # 7x7/s2 stem
    x = maxpool_3x3_s2(x)
    for layer in params['layers']:
        for blk, stride in layer:
            x = bottleneck(x, blk, stride)
    # adaptive avgpool(1x1).squeeze -> Linear(2048, E, bias=False) -> ReLU
    feat = jnp.mean(x.astype(jnp.float32), axis=(1, 2))
    emb = params['embed']
    return matmul_bias_act(feat, emb['w'], emb['b'], act=True,
                           n_out=emb['cout'], out_dtype=jnp.float32)


# --------------------------------------------------------------------------
# Deterministic parameter construction (synthetic ResNet-50 weights)
# --------------------------------------------------------------------------

class KeyGen:
    def __init__(self, seed):
        self._key = jax.random.PRNGKey(seed)

    def __call__(self):
        self._key, sub = jax.random.split(self._key)
        return sub


def conv_bn_params(kg, kh, kw, cin, cout, eps=1e-5, fused_taps=False):
    """Random conv + folded inference BatchNorm, pre-cast to bf16 and pre-padded
    once to the lane-aligned layout the kernels consume.

    fused_taps=True  -> (kh*kw*cin_p, Np) with one 128-aligned cin slot per tap
                        (consumed by the fused stride-1 conv kernel).
    fused_taps=False -> (round_up(kh*kw*cin, 128), Np) im2col-ordered rows.
    """
    fan_in = kh * kw * cin
    w = jax.random.normal(kg(), (kh, kw, cin, cout), jnp.float32) / math.sqrt(fan_in)
    gamma = jax.random.uniform(kg(), (cout,), jnp.float32, 0.5, 1.5)
    beta = 0.1 * jax.random.normal(kg(), (cout,), jnp.float32)
    mean = 0.1 * jax.random.normal(kg(), (cout,), jnp.float32)
    var = jax.random.uniform(kg(), (cout,), jnp.float32, 0.5, 1.5)
    scale = gamma / jnp.sqrt(var + eps)                 # fold inference BN
    w_fold = (w * scale).astype(jnp.bfloat16)
    b_fold = beta - mean * scale

    Np = _round_up(cout, 128)
    cin_p = _round_up(cin, 128)
    if fused_taps:
        wm = jnp.pad(w_fold.reshape(kh * kw, cin, cout),
                     ((0, 0), (0, cin_p - cin), (0, Np - cout)))
        wm = wm.reshape(kh * kw * cin_p, Np)
    else:
        K = kh * kw * cin
        Kp = _round_up(K, 128)
        wm = jnp.pad(w_fold.reshape(K, cout), ((0, Kp - K), (0, Np - cout)))
    b_p = jnp.zeros((1, Np), jnp.float32).at[0, :cout].set(b_fold)
    return dict(w=wm, b=b_p, kh=kh, kw=kw, cin=cin, cout=cout, cin_p=cin_p)


def make_encoder_params(seed, embed_dim):
    kg = KeyGen(seed)
    params = {'stem': conv_bn_params(kg, 7, 7, 3, 64)}
    layers = []
    cin = 64
    for n_blocks, width, stride in [(3, 64, 1), (4, 128, 2), (6, 256, 2), (3, 512, 2)]:
        layer = []
        for i in range(n_blocks):
            s = stride if i == 0 else 1
            blk = {
                'c1': conv_bn_params(kg, 1, 1, cin, width),
                'c2': conv_bn_params(kg, 3, 3, width, width, fused_taps=(s == 1)),
                'c3': conv_bn_params(kg, 1, 1, width, width * 4),
            }
            if i == 0:   # torchvision adds downsample when stride != 1 or cin != 4*width
                blk['ds'] = conv_bn_params(kg, 1, 1, cin, width * 4)
            layer.append((blk, s))
            cin = width * 4
        layers.append(layer)
    params['layers'] = layers
    Ep = _round_up(embed_dim, 128)
    w_e = (jax.random.normal(kg(), (2048, embed_dim), jnp.float32)
           / math.sqrt(2048.0)).astype(jnp.bfloat16)
    params['embed'] = dict(
        w=jnp.zeros((2048, Ep), jnp.bfloat16).at[:, :embed_dim].set(w_e),
        b=jnp.zeros((1, Ep), jnp.float32),          # the Linear has no bias
        cout=embed_dim)
    return params


# --------------------------------------------------------------------------

if __name__ == "__main__":
    EMBED_DIM = 32
    params = make_encoder_params(0, EMBED_DIM)

    # internal consistency: fused slab/one-dot conv vs the im2col + matmul path
    p_fused = conv_bn_params(KeyGen(7), 3, 3, 64, 64, fused_taps=True)
    p_flat = conv_bn_params(KeyGen(7), 3, 3, 64, 64, fused_taps=False)
    chk_x = jax.random.normal(jax.random.PRNGKey(1), (1, 8, 8, 64), jnp.float32)
    a = conv3x3_s1(chk_x.astype(jnp.bfloat16), p_fused, act=True)
    r = conv_im2col(chk_x.astype(jnp.bfloat16), p_flat, stride=1, pad=1, act=True)
    assert jnp.allclose(a.astype(jnp.float32), r.astype(jnp.float32),
                        atol=2e-2, rtol=2e-2), "fused conv mismatch"

    # small input consistent with the module: NCHW, 3 channels, 64x64 spatial
    x = jax.random.normal(jax.random.PRNGKey(0), (2, 3, 64, 64), jnp.float32)
    out = encoder_forward(params, x)
    out = jax.block_until_ready(out)

    assert out.shape == (2, EMBED_DIM), out.shape
    assert bool(jnp.all(jnp.isfinite(out)))
    assert bool(jnp.all(out >= 0.0))           # final ReLU
    print("KERNEL_OK")
</pallas_src>

<mosaic_0001>
module attributes {stable_mosaic.version = 11 : i64} {
  func.func @_conv_s1_kernel(%arg0: i32, %arg1: memref<144x128xbf16, #tpu.memory_space<any>>, %arg2: memref<1152x128xbf16, #tpu.memory_space<vmem>>, %arg3: memref<1x128xf32, #tpu.memory_space<vmem>>, %arg4: memref<112x128xbf16, #tpu.memory_space<vmem>>, %arg5: memref<2x144x128xbf16, #tpu.memory_space<vmem>>, %arg6: memref<2x!tpu.dma_semaphore, #tpu.memory_space<semaphore_mem>>, %arg7: memref<112x1152xbf16, #tpu.memory_space<vmem>>) attributes {dimension_semantics = [#tpu.dimension_semantics<arbitrary>], iteration_bounds = array<i64: 1>, scalar_prefetch = 0 : i64, scratch_operands = 3 : i64, tpu.core_type = #tpu.core_type<tc>, window_params = [{}, {pipeline_mode = #tpu.pipeline_mode<synchronous>, transform_indices = @transform_1, window_bounds = array<i64: 1152, 128>}, {pipeline_mode = #tpu.pipeline_mode<synchronous>, transform_indices = @transform_2, window_bounds = array<i64: 1, 128>}, {transform_indices = @transform_3, window_bounds = array<i64: 112, 128>}]} {
    %c2_i32 = arith.constant 2 : i32
    %0 = arith.remsi %arg0, %c2_i32 : i32
    %c0_i32 = arith.constant 0 : i32
    %1 = arith.cmpi eq, %arg0, %c0_i32 : i32
    %2 = arith.extui %1 : i1 to i32
    %c0_i32_0 = arith.constant 0 : i32
    %3 = arith.cmpi ne, %2, %c0_i32_0 : i32
    scf.if %3 {
      %c0_i32_27 = arith.constant 0 : i32
      %c0_i32_28 = arith.constant 0 : i32
      %c0_i32_29 = arith.constant 0 : i32
      %c0_i32_30 = arith.constant 0 : i32
      %44 = tpu.memref_slice %arg1[%c0_i32_29, %c0_i32_30] : memref<144x128xbf16, #tpu.memory_space<any>> -> memref<144x128xbf16, #tpu.memory_space<any>>
      %c0_i32_31 = arith.constant 0 : i32
      %c0_i32_32 = arith.constant 0 : i32
      %45 = tpu.memref_slice %arg5[%c0_i32_27, %c0_i32_31, %c0_i32_32] : memref<2x144x128xbf16, #tpu.memory_space<vmem>> -> memref<1x144x128xbf16, #tpu.memory_space<vmem>>
      %46 = tpu.memref_squeeze %45 : memref<1x144x128xbf16, #tpu.memory_space<vmem>> -> memref<144x128xbf16, #tpu.memory_space<vmem>>
      %47 = tpu.memref_slice %arg6[%c0_i32_28] : memref<2x!tpu.dma_semaphore, #tpu.memory_space<semaphore_mem>> -> memref<1x!tpu.dma_semaphore, #tpu.memory_space<semaphore_mem>>
      %48 = tpu.memref_squeeze %47 : memref<1x!tpu.dma_semaphore, #tpu.memory_space<semaphore_mem>> -> memref<!tpu.dma_semaphore, #tpu.memory_space<semaphore_mem>>
      tpu.enqueue_dma source(%44 : memref<144x128xbf16, #tpu.memory_space<any>>) target(%46 : memref<144x128xbf16, #tpu.memory_space<vmem>>) target_semaphore(%48 : memref<!tpu.dma_semaphore, #tpu.memory_space<semaphore_mem>>)
    } else {
    }
    %c1_i32 = arith.constant 1 : i32
    %4 = arith.addi %arg0, %c1_i32 : i32
    %c1_i32_1 = arith.constant 1 : i32
    %5 = arith.cmpi slt, %4, %c1_i32_1 : i32
    %6 = arith.extui %5 : i1 to i32
    %c0_i32_2 = arith.constant 0 : i32
    %7 = arith.cmpi ne, %6, %c0_i32_2 : i32
    scf.if %7 {
      %c1_i32_27 = arith.constant 1 : i32
      %44 = arith.addi %arg0, %c1_i32_27 : i32
      %c1_i32_28 = arith.constant 1 : i32
      %45 = arith.subi %c1_i32_28, %0 : i32
      %c112_i32 = arith.constant 112 : i32
      %46 = arith.muli %44, %c112_i32 : i32
      %c0_i32_29 = arith.constant 0 : i32
      %47 = tpu.memref_slice %arg1[%46, %c0_i32_29] : memref<144x128xbf16, #tpu.memory_space<any>> -> memref<144x128xbf16, #tpu.memory_space<any>>
      %c0_i32_30 = arith.constant 0 : i32
      %c0_i32_31 = arith.constant 0 : i32
      %48 = tpu.memref_slice %arg5[%45, %c0_i32_30, %c0_i32_31] : memref<2x144x128xbf16, #tpu.memory_space<vmem>> -> memref<1x144x128xbf16, #tpu.memory_space<vmem>>
      %49 = tpu.memref_squeeze %48 : memref<1x144x128xbf16, #tpu.memory_space<vmem>> -> memref<144x128xbf16, #tpu.memory_space<vmem>>
      %50 = tpu.memref_slice %arg6[%45] : memref<2x!tpu.dma_semaphore, #tpu.memory_space<semaphore_mem>> -> memref<1x!tpu.dma_semaphore, #tpu.memory_space<semaphore_mem>>
      %51 = tpu.memref_squeeze %50 : memref<1x!tpu.dma_semaphore, #tpu.memory_space<semaphore_mem>> -> memref<!tpu.dma_semaphore, #tpu.memory_space<semaphore_mem>>
      tpu.enqueue_dma source(%47 : memref<144x128xbf16, #tpu.memory_space<any>>) target(%49 : memref<144x128xbf16, #tpu.memory_space<vmem>>) target_semaphore(%51 : memref<!tpu.dma_semaphore, #tpu.memory_space<semaphore_mem>>)
    } else {
    }
    %c0_i32_3 = arith.constant 0 : i32
    %c0_i32_4 = arith.constant 0 : i32
    %8 = tpu.memref_slice %arg1[%c0_i32_3, %c0_i32_4] : memref<144x128xbf16, #tpu.memory_space<any>> -> memref<144x128xbf16, #tpu.memory_space<any>>
    %c0_i32_5 = arith.constant 0 : i32
    %c0_i32_6 = arith.constant 0 : i32
    %9 = tpu.memref_slice %arg5[%0, %c0_i32_5, %c0_i32_6] : memref<2x144x128xbf16, #tpu.memory_space<vmem>> -> memref<1x144x128xbf16, #tpu.memory_space<vmem>>
    %10 = tpu.memref_squeeze %9 : memref<1x144x128xbf16, #tpu.memory_space<vmem>> -> memref<144x128xbf16, #tpu.memory_space<vmem>>
    %11 = tpu.memref_slice %arg6[%0] : memref<2x!tpu.dma_semaphore, #tpu.memory_space<semaphore_mem>> -> memref<1x!tpu.dma_semaphore, #tpu.memory_space<semaphore_mem>>
    %12 = tpu.memref_squeeze %11 : memref<1x!tpu.dma_semaphore, #tpu.memory_space<semaphore_mem>> -> memref<!tpu.dma_semaphore, #tpu.memory_space<semaphore_mem>>
    tpu.wait_dma2 semaphore(%12 : memref<!tpu.dma_semaphore, #tpu.memory_space<semaphore_mem>>) src(%8 : memref<144x128xbf16, #tpu.memory_space<any>>) dst(%10 : memref<144x128xbf16, #tpu.memory_space<vmem>>)
    %13 = arith.index_cast %0 : i32 to index
    %c0 = arith.constant 0 : index
    %c0_7 = arith.constant 0 : index
    %14 = vector.load %arg5[%13, %c0, %c0_7] : memref<2x144x128xbf16, #tpu.memory_space<vmem>>, vector<1x144x128xbf16>
    %15 = vector.shape_cast %14 : vector<1x144x128xbf16> to vector<144x128xbf16>
    %16 = vector.extract_strided_slice %15 {offsets = [0, 0], sizes = [112, 128], strides = [1, 1]} : vector<144x128xbf16> to vector<112x128xbf16>
    %c0_8 = arith.constant 0 : index
    %c0_9 = arith.constant 0 : index
    %17 = vector.load %arg7[%c0_8, %c0_9] : memref<112x1152xbf16, #tpu.memory_space<vmem>>, vector<112x128xbf16>
    tpu.vector_store %arg7[%c0_8, %c0_9], %16 {strides = array<i32>} : memref<112x1152xbf16, #tpu.memory_space<vmem>>, vector<112x128xbf16>,
    %18 = vector.extract_strided_slice %15 {offsets = [1, 0], sizes = [112, 128], strides = [1, 1]} : vector<144x128xbf16> to vector<112x128xbf16>
    %c0_10 = arith.constant 0 : index
    %c128 = arith.constant 128 : index
    %19 = vector.load %arg7[%c0_10, %c128] : memref<112x1152xbf16, #tpu.memory_space<vmem>>, vector<112x128xbf16>
    tpu.vector_store %arg7[%c0_10, %c128], %18 {strides = array<i32>} : memref<112x1152xbf16, #tpu.memory_space<vmem>>, vector<112x128xbf16>,
    %20 = vector.extract_strided_slice %15 {offsets = [2, 0], sizes = [112, 128], strides = [1, 1]} : vector<144x128xbf16> to vector<112x128xbf16>
    %c0_11 = arith.constant 0 : index
    %c256 = arith.constant 256 : index
    %21 = vector.load %arg7[%c0_11, %c256] : memref<112x1152xbf16, #tpu.memory_space<vmem>>, vector<112x128xbf16>
    tpu.vector_store %arg7[%c0_11, %c256], %20 {strides = array<i32>} : memref<112x1152xbf16, #tpu.memory_space<vmem>>, vector<112x128xbf16>,
    %22 = vector.extract_strided_slice %15 {offsets = [10, 0], sizes = [112, 128], strides = [1, 1]} : vector<144x128xbf16> to vector<112x128xbf16>
    %c0_12 = arith.constant 0 : index
    %c384 = arith.constant 384 : index
    %23 = vector.load %arg7[%c0_12, %c384] : memref<112x1152xbf16, #tpu.memory_space<vmem>>, vector<112x128xbf16>
    tpu.vector_store %arg7[%c0_12, %c384], %22 {strides = array<i32>} : memref<112x1152xbf16, #tpu.memory_space<vmem>>, vector<112x128xbf16>,
    %24 = vector.extract_strided_slice %15 {offsets = [11, 0], sizes = [112, 128], strides = [1, 1]} : vector<144x128xbf16> to vector<112x128xbf16>
    %c0_13 = arith.constant 0 : index
    %c512 = arith.constant 512 : index
    %25 = vector.load %arg7[%c0_13, %c512] : memref<112x1152xbf16, #tpu.memory_space<vmem>>, vector<112x128xbf16>
    tpu.vector_store %arg7[%c0_13, %c512], %24 {strides = array<i32>} : memref<112x1152xbf16, #tpu.memory_space<vmem>>, vector<112x128xbf16>,
    %26 = vector.extract_strided_slice %15 {offsets = [12, 0], sizes = [112, 128], strides = [1, 1]} : vector<144x128xbf16> to vector<112x128xbf16>
    %c0_14 = arith.constant 0 : index
    %c640 = arith.constant 640 : index
    %27 = vector.load %arg7[%c0_14, %c640] : memref<112x1152xbf16, #tpu.memory_space<vmem>>, vector<112x128xbf16>
    tpu.vector_store %arg7[%c0_14, %c640], %26 {strides = array<i32>} : memref<112x1152xbf16, #tpu.memory_space<vmem>>, vector<112x128xbf16>,
    %28 = vector.extract_strided_slice %15 {offsets = [20, 0], sizes = [112, 128], strides = [1, 1]} : vector<144x128xbf16> to vector<112x128xbf16>
    %c0_15 = arith.constant 0 : index
    %c768 = arith.constant 768 : index
    %29 = vector.load %arg7[%c0_15, %c768] : memref<112x1152xbf16, #tpu.memory_space<vmem>>, vector<112x128xbf16>
    tpu.vector_store %arg7[%c0_15, %c768], %28 {strides = array<i32>} : memref<112x1152xbf16, #tpu.memory_space<vmem>>, vector<112x128xbf16>,
    %30 = vector.extract_strided_slice %15 {offsets = [21, 0], sizes = [112, 128], strides = [1, 1]} : vector<144x128xbf16> to vector<112x128xbf16>
    %c0_16 = arith.constant 0 : index
    %c896 = arith.constant 896 : index
    %31 = vector.load %arg7[%c0_16, %c896] : memref<112x1152xbf16, #tpu.memory_space<vmem>>, vector<112x128xbf16>
    tpu.vector_store %arg7[%c0_16, %c896], %30 {strides = array<i32>} : memref<112x1152xbf16, #tpu.memory_space<vmem>>, vector<112x128xbf16>,
    %32 = vector.extract_strided_slice %15 {offsets = [22, 0], sizes = [112, 128], strides = [1, 1]} : vector<144x128xbf16> to vector<112x128xbf16>
    %c0_17 = arith.constant 0 : index
    %c1024 = arith.constant 1024 : index
    %33 = vector.load %arg7[%c0_17, %c1024] : memref<112x1152xbf16, #tpu.memory_space<vmem>>, vector<112x128xbf16>
    tpu.vector_store %arg7[%c0_17, %c1024], %32 {strides = array<i32>} : memref<112x1152xbf16, #tpu.memory_space<vmem>>, vector<112x128xbf16>,
    %c0_18 = arith.constant 0 : index
    %c0_19 = arith.constant 0 : index
    %34 = vector.load %arg7[%c0_18, %c0_19] : memref<112x1152xbf16, #tpu.memory_space<vmem>>, vector<112x1152xbf16>
    %c0_20 = arith.constant 0 : index
    %c0_21 = arith.constant 0 : index
    %35 = vector.load %arg2[%c0_20, %c0_21] : memref<1152x128xbf16, #tpu.memory_space<vmem>>, vector<1152x128xbf16>
    %cst = arith.constant dense<0.000000e+00> : vector<112x128xf32>
    %36 = tpu.matmul %34, %35, %cst {dimension_numbers = #tpu.dot_dimension_numbers<[1], [0], [0], [1], [0, 0, 1, 1], [], []>} : vector<112x1152xbf16>, vector<1152x128xbf16>, vector<112x128xf32> -> vector<112x128xf32>
    %c0_22 = arith.constant 0 : index
    %c0_23 = arith.constant 0 : index
    %37 = vector.load %arg3[%c0_22, %c0_23] : memref<1x128xf32, #tpu.memory_space<vmem>>, vector<1x128xf32>
    %38 = vector.broadcast %37 : vector<1x128xf32> to vector<112x128xf32>
    %39 = arith.addf %36, %38 : vector<112x128xf32>
    %cst_24 = arith.constant 0.000000e+00 : f32
    %40 = vector.broadcast %cst_24 : f32 to vector<112x128xf32>
    %41 = arith.maximumf %39, %40 : vector<112x128xf32>
    %42 = arith.truncf %41 : vector<112x128xf32> to vector<112x128xbf16>
    %c0_25 = arith.constant 0 : index
    %c0_26 = arith.constant 0 : index
    %43 = vector.load %arg4[%c0_25, %c0_26] : memref<112x128xbf16, #tpu.memory_space<vmem>>, vector<112x128xbf16>
    tpu.vector_store %arg4[%c0_25, %c0_26], %42 {strides = array<i32>} : memref<112x128xbf16, #tpu.memory_space<vmem>>, vector<112x128xbf16>,
    return
  }
  func.func @transform_1(%arg0: i32) -> (i32, i32) {
    %c0_i32 = arith.constant 0 : i32
    %c0_i32_0 = arith.constant 0 : i32
    %c0_i32_1 = arith.constant 0 : i32
    return %c0_i32, %c0_i32_0 : i32, i32
  }
  func.func @transform_2(%arg0: i32) -> (i32, i32) {
    %c0_i32 = arith.constant 0 : i32
    %c0_i32_0 = arith.constant 0 : i32
    %c0_i32_1 = arith.constant 0 : i32
    return %c0_i32, %c0_i32_0 : i32, i32
  }
  func.func @transform_3(%arg0: i32) -> (i32, i32) {
    %c0_i32 = arith.constant 0 : i32
    %c0_i32_0 = arith.constant 0 : i32
    return %arg0, %c0_i32 : i32, i32
  }
}

</mosaic_0001>

<bundles_post_ra>
// kernel: tpu_custom_call.1
= control target key start
LH: loop header
LB: loop body
LE: loop exit
PB: predicated region body
PF: predicated region fallthrough
CT: control target
= control target key end

     0   :  { %8 = vsyncpa [#allocation6], 0  ;;  %s3743_s0 = inlined_call_operand.hbm [shape: bf16[144,128], index: 0, kind: input, shape index: {}]   ;;  %s3744_s1 = inlined_call_operand.hbm [shape: bf16[1152,128], index: 1, kind: input, shape index: {}]   ;;  %s3745_s2 = inlined_call_operand.vmem [shape: f32[1,128], index: 2, kind: input, shape index: {}]   ;;  %s3746_s3 = inlined_call_operand.hbm [shape: bf16[112,128], index: 3, kind: output, shape index: {}]  }
   0x1   :  { %9 = vsyncpa [#allocation7], 0  ;;  %s14_s14 = sshll.u32 %s3744_s1, 4  ;;  %s3060_s15 = smov [#allocation5]   ;;  %s15_s14 = int_to_ptr.hbm [resolvable:$true] %s14_s14 }
   0x2   :  { %s16_s16 = sshll.u32 %s3060_s15, 4  ;;  %s3061_s17 = smov 64   ;;  %s17_s16 = int_to_ptr.vmem [resolvable:$true] %s16_s16 }
   0x3   :  { %s3062_s18 = smov 4  }
   0x4   :  { %22 = dma.hbm_to_vmem [thread:$0]  %s15_s14, 9216, %s17_s16, [#allocation6], %s3061_s17, %s3061_s17, %s3062_s18  }
   0x5   :  { %3054 = dma.done.wait [#allocation6], 9216  }
   0x6   :  { %3055 = vsyncadd [#allocation6], 4294958080  ;;  %s42_s21 = sshll.u32 %s3743_s0, 4  ;;  %s3063_s22 = smov [#allocation2]   ;;  %s43_s21 = int_to_ptr.hbm [resolvable:$true] %s42_s21 }
   0x7   :  { %s44_s23 = sshll.u32 %s3063_s22, 4  ;;  %s45_s23 = int_to_ptr.vmem [resolvable:$true] %s44_s23 }
   0x8   :  { %47 = dma.hbm_to_vmem [thread:$0]  %s43_s21, 1152, %s45_s23, [#allocation3] }
   0x9   :  { %3056 = dma.done.wait [#allocation3], 1152 }
   0xa   :  { %3057 = vsyncadd [#allocation3], 4294966144  ;;  %v2846_v0 = vld [vmem:[#allocation5 + $0x38] sm:$0xff]  ;;  %v2845_v1 = vld [vmem:[#allocation5 + $0x30] sm:$0xff]  ;;  %vm304_vm0 = vcmask 1042432   ;;  %vm305_vm1 = vcmask 1046532  }
   0xb   :  { %2952 = vmatpush.bf16.msra.mxu1 %v2846_v0  ;;  %2953 = vmatpush.bf16.msra.mxu2 %v2846_v0  ;;  %v3094_v2 = vld [vmem:[#allocation2 + $0x10] sm:$0xf]  ;;  %v3096_v3 = vld [vmem:[#allocation2 + $0x14] sm:$0xf]  ;;  %v3098_v4 = vld [vmem:[#allocation2 + $0x20] sm:$0xf] }
   0xc   :  { %2954 = vmatpush.bf16.msra.mxu3 %v2846_v0  ;;  %1756 = vmatpush.bf16.msra.mxu0 %v2846_v0  ;;  %104 = vst [vmem:[#allocation4 + $0x90] sm:$0xf] %v3094_v2  ;;  %v3101_v5 = vld [vmem:[#allocation2 + $0x24] sm:$0xf]  ;;  %v3104_v6 = vld [vmem:[#allocation2] sm:$0xf]  ;;  %vm3146_vm2 = vmor %vm304_vm0, %vm305_vm1 }
   0xd   :  { %105 = vst [vmem:[#allocation4 + $0xb4] sm:$0xf] %v3096_v3  ;;  %v2844_v7 = vld [vmem:[#allocation5 + $0x28] sm:$0xff]  ;;  %v3107_v8 = vld [vmem:[#allocation2 + $0x4] sm:$0xf]  ;;  %v2843_v10 = vld [vmem:[#allocation5 + $0x20] sm:$0xff] }
   0xe   :  { %108 = vst [vmem:[#allocation4 + $0x120] sm:$0xf] %v3098_v4  ;;  %v3112_v9 = vld [vmem:[#allocation2 + $0x30] sm:$0xf]  ;;  %v3114_v11 = vld [vmem:[#allocation2 + $0x34] sm:$0xf] }
   0xf   :  { %2955 = vmatpush.bf16.msra.mxu1 %v2845_v1  ;;  %2956 = vmatpush.bf16.msra.mxu2 %v2845_v1  ;;  %109 = vst [vmem:[#allocation4 + $0x144] sm:$0xf] %v3101_v5  ;;  %v118_v12 = vshrl.u32 %v3104_v6, 16  ;;  %v121_v13 = vshll.u32 %v3104_v6, 16  ;;  %v3120_v14 = vld [vmem:[#allocation2 + $0x18] sm:$0xf] }
  0x10   :  { %2957 = vmatpush.bf16.msra.mxu3 %v2845_v1  ;;  %1757 = vmatpush.bf16.msra.mxu0 %v2845_v1  ;;  %100 = vst [vmem:[#allocation4] sm:$0xf] %v3104_v6  ;;  %v3122_v15 = vld [vmem:[#allocation2 + $0x1c] sm:$0xf]  ;;  %v2842_v16 = vld [vmem:[#allocation5 + $0x18] sm:$0xff]  ;;  %v127_v25 = vshll.u32 %v3107_v8, 16 }
  0x11   :  { %101 = vst [vmem:[#allocation4 + $0x24] sm:$0xf] %v3107_v8  ;;  %v120_v17 = vrot.slane %v118_v12, 4  ;;  %v123_v18 = vrot.slane %v121_v13, 5  ;;  %v3126_v19 = vld [vmem:[#allocation2 + $0x28] sm:$0xf] }
  0x12   :  { %3751 = vst [vmem:[#allocation18_spill] sm:$0xff] %v3114_v11  ;;  %v3128_v20 = vld [vmem:[#allocation2 + $0x2c] sm:$0xf]  ;;  %v2841_v21 = vld [vmem:[#allocation5 + $0x10] sm:$0xff]  ;;  %v3132_v22 = vld [vmem:[#allocation2 + $0x8] sm:$0xf] }
  0x13   :  { %2958 = vmatpush.bf16.msra.mxu1 %v2844_v7  ;;  %2959 = vmatpush.bf16.msra.mxu2 %v2844_v7  ;;  %112 = vst [vmem:[#allocation4 + $0x1b0] sm:$0xf] %v3112_v9  ;;  %v3134_v23 = vld [vmem:[#allocation2 + $0xc] sm:$0xf]  ;;  %v124_v24 = vor.u32 %v123_v18, %v120_v17  ;;  %v2840_v26 = vld [vmem:[#allocation5 + $0x8] sm:$0xff]  ;;  %v309_v27 = vrot.slane %v3107_v8, 5 }
  0x14   :  { %2960 = vmatpush.bf16.msra.mxu3 %v2844_v7  ;;  %1758 = vmatpush.bf16.msra.mxu0 %v2844_v7  ;;  %113 = vst [vmem:[#allocation4 + $0x1d4] sm:$0xf] %v3114_v11  ;;  %v312_v28 = vrot.slane %v3132_v22, 5  ;;  %v315_v29 = vrot.slane %v3134_v23, 5  ;;  %v3142_v30 = vld [vmem:[#allocation4 + $0x90] sm:$0xf] }
  0x15   :  { %106 = vst [vmem:[#allocation4 + $0xd8] sm:$0xf] %v3120_v14  ;;  %v3144_v31 = vld [vmem:[#allocation4 + $0xb0] sm:$0xf0]  ;;  %vm114_vm3 = vsmask.f32 3328 }
  0x16   :  { %107 = vst [vmem:[#allocation4 + $0xfc] sm:$0xf] %v3122_v15  ;;  %v311_v33 = vrot.slane %v309_v27, 4  ;;  %v314_v34 = vrot.slane %v312_v28, 4  ;;  %vm115_vm4 = vsmask.f32 7440  ;;  %v2309_v51 = vor.u32 %v3144_v31, %v3142_v30 }
  0x17   :  { %2961 = vmatpush.bf16.msra.mxu1 %v2843_v10  ;;  %2962 = vmatpush.bf16.msra.mxu2 %v2843_v10  ;;  %110 = vst [vmem:[#allocation4 + $0x168] sm:$0xf] %v3126_v19  ;;  %v125_v35 = vrot.slane %v124_v24, 4  ;;  %v2839_v36 = vld [vmem:[#allocation5] sm:$0xff]  ;;  %v2380_v37 = vld [vmem:[#allocation4 + $0x120] sm:$0xf]  ;;  %vm3160_vm5 = vmor %vm114_vm3, %vm115_vm4 }
  0x18   :  { %2963 = vmatpush.bf16.msra.mxu3 %v2843_v10  ;;  %1759 = vmatpush.bf16.msra.mxu0 %v2843_v10  ;;  %111 = vst [vmem:[#allocation4 + $0x18c] sm:$0xf] %v3128_v20  ;;  %v2816_v38 = vld [vmem:[#allocation4 + $0x140] sm:$0xf0]  ;;  %v129_v39 = vrot.slane %v127_v25, 5  ;;  %v131_v40 = vshrl.u32 %v3107_v8, 16  ;;  %v313_v42 = vsel %vm3146_vm2, %v311_v33, %v312_v28  ;;  %v316_v43 = vsel %vm3146_vm2, %v314_v34, %v315_v29 }
  0x19   :  { %102 = vst [vmem:[#allocation4 + $0x48] sm:$0xf] %v3132_v22  ;;  %v3151_v41 = vld [vmem:[#allocation4] sm:$0xf]  ;;  %v3165_v45 = vshll.u32 %v3132_v22, 16  ;;  %v2231_v46 = vrot.slane %v3104_v6, 9  ;;  %v2381_v62 = vor.u32 %v2816_v38, %v2380_v37 }
  0x1a   :  { %103 = vst [vmem:[#allocation4 + $0x6c] sm:$0xf] %v3134_v23  ;;  %v2870_v47 = vld [vmem:[#allocation5 + $0xf8] sm:$0xff]  ;;  %v2780_v48 = vld [vmem:[#allocation4 + $0x20] sm:$0xf0]  ;;  %v133_v49 = vrot.slane %v131_v40, 4  ;;  %v130_v54 = vsel %vm3160_vm5, %v125_v35, %v129_v39 }
  0x1b   :  { %2964 = vmatpush.bf16.msra.mxu1 %v2842_v16  ;;  %2965 = vmatpush.bf16.msra.mxu2 %v2842_v16  ;;  %383 = vst [vmem:[#allocation4 + $0xc] sm:$0xf] %v313_v42  ;;  %v3169_v50 = vshrl.u32 %v3132_v22, 16  ;;  %v2862_v52 = vld [vmem:[#allocation5 + $0xb8] sm:$0xff]  ;;  %v139_v55 = vrot.slane %v3165_v45, 5  ;;  %v310_v59 = vsel %vm3146_vm2, %v2231_v46, %v309_v27  ;;  %v3179_v60 = vshll.u32 %v3134_v23, 16 }
  0x1c   :  { %2966 = vmatpush.bf16.msra.mxu3 %v2842_v16  ;;  %1760 = vmatpush.bf16.msra.mxu0 %v2842_v16  ;;  %v2452_v53 = vld [vmem:[#allocation4 + $0x1b0] sm:$0xf]  ;;  %384 = vst [vmem:[#allocation4 + $0x30] sm:$0xf] %v316_v43  ;;  %v2834_v57 = vld [vmem:[#allocation4 + $0x1d0] sm:$0xf0]  ;;  %v134_v58 = vor.u32 %v133_v49, %v129_v39  ;;  %v2237_v63 = vor.u32 %v2780_v48, %v3151_v41 }
  0x1d   :  { %v2854_v56 = vld [vmem:[#allocation5 + $0x78] sm:$0xff]  ;;  %365 = vst [vmem:[#allocation4 + $0x2c] sm:$0xf] %v313_v42  ;;  %v3182_v61 = vshrl.u32 %v3134_v23, 16  ;;  %vm397_vm6 = vsmask.f32 2304  ;;  %v2453_v12 = vor.u32 %v2834_v57, %v2452_v53 }
  0x1e   :  { %366 = vst [vmem:[#allocation4 + $0x50] sm:$0xf] %v316_v43  ;;  %vm398_vm7 = vsmask.f32 6416  ;;  %v135_v0 = vrot.slane %v134_v58, 4  ;;  %v400_v1 = vrot.slane %v131_v40, 5 }
  0x1f   :  { %2967 = vmatpush.bf16.msra.mxu1 %v2841_v21  ;;  %2968 = vmatpush.bf16.msra.mxu2 %v2841_v21  ;;  %275 = vst [vmem:[#allocation4 + $0x4] sm:$0xf] %v130_v54  ;;  %v401_v6 = vrot.slane %v127_v25, 6  ;;  %v404_v7 = vrot.slane %v3169_v50, 5  ;;  %v2878_v10 = vld [vmem:[#allocation5 + $0x138] sm:$0xff]  ;;  %v405_v13 = vrot.slane %v3165_v45, 6  ;;  %vm3194_vm8 = vmor %vm397_vm6, %vm398_vm7 }
  0x20   :  { %2969 = vmatpush.bf16.msra.mxu3 %v2841_v21  ;;  %1761 = vmatpush.bf16.msra.mxu0 %v2841_v21  ;;  %364 = vst [vmem:[#allocation4 + $0x8] sm:$0xf] %v310_v59  ;;  %v409_v16 = vrot.slane %v3182_v61, 5  ;;  %v410_v17 = vrot.slane %v3179_v60, 6  ;;  %v2869_v18 = vld [vmem:[#allocation5 + $0xf0] sm:$0xff]  ;;  %v140_v24 = vsel %vm3160_vm5, %v135_v0, %v139_v55  ;;  %v143_v31 = vrot.slane %v3169_v50, 4 }
  0x21   :  { %v2861_v21 = vld [vmem:[#allocation5 + $0xb0] sm:$0xff]  ;;  %v402_v25 = vor.u32 %v401_v6, %v400_v1  ;;  %276 = vst [vmem:[#allocation4 + $0x28] sm:$0xf] %v140_v24  ;;  %v406_v28 = vor.u32 %v405_v13, %v404_v7  ;;  %v317_v35 = vrot.slane %v315_v29, 4  ;;  %v321_v39 = vrot.slane %v3096_v3, 5  ;;  %v2868_v40 = vld [vmem:[#allocation5 + $0xe8] sm:$0xff] }
  0x22   :  { %v3198_v30 = vor.u32 %v410_v17, %v409_v16  ;;  %v2853_v33 = vld [vmem:[#allocation5 + $0x70] sm:$0xff]  ;;  %v2860_v41 = vld [vmem:[#allocation5 + $0xa8] sm:$0xff]  ;;  %v144_v46 = vor.u32 %v143_v31, %v139_v55  ;;  %v149_v29 = vrot.slane %v3179_v60, 5  ;;  %v153_v49 = vrot.slane %v3182_v61, 4  ;;  %v2867_v53 = vld [vmem:[#allocation5 + $0xe0] sm:$0xff]  ;;  %s2200_s27 = sshll.u32 %s3746_s3, 4  ;;  %s2201_s27 = int_to_ptr.hbm [resolvable:$true] %s2200_s27 }
  0x23   :  { %2970 = vmatpush.bf16.msra.mxu1 %v2840_v26  ;;  %2971 = vmatpush.bf16.msra.mxu2 %v2840_v26  ;;  %v403_v34 = vrot.slane %v402_v25, 4  ;;  %v408_v37 = vrot.slane %v406_v28, 4  ;;  %v3221_v55 = vshrl.u32 %v3094_v2, 16  ;;  %v2859_v57 = vld [vmem:[#allocation5 + $0xa0] sm:$0xff]  ;;  %v2416_v6 = vld [vmem:[#allocation4 + $0x168] sm:$0xf] }
  0x24   :  { %2972 = vmatpush.bf16.msra.mxu3 %v2840_v26  ;;  %1762 = vmatpush.bf16.msra.mxu0 %v2840_v26  ;;  %v318_v26 = vrot.slane %v3094_v2, 5  ;;  %v145_v54 = vrot.slane %v144_v46, 4  ;;  %v154_v58 = vor.u32 %v153_v49, %v149_v29  ;;  %v2344_v0 = vld [vmem:[#allocation4 + $0xd8] sm:$0xf]  ;;  %v2807_v1 = vld [vmem:[#allocation4 + $0xf8] sm:$0xf0] }
  0x25   :  { %v407_v42 = vsel %vm3194_vm8, %v403_v34, %v406_v28  ;;  %v413_v16 = vrot.slane %v3198_v30, 4  ;;  %v414_v17 = vrot.slane %v3221_v55, 5  ;;  %v2789_v28 = vld [vmem:[#allocation4 + $0x68] sm:$0xf0]  ;;  %v2858_v34 = vld [vmem:[#allocation5 + $0x98] sm:$0xff]  ;;  %v163_v49 = vrot.slane %v3221_v55, 4 }
  0x26   :  { %v320_v38 = vrot.slane %v318_v26, 4  ;;  %v319_v43 = vsel %vm3146_vm2, %v317_v35, %v318_v26  ;;  %494 = vst [vmem:[#allocation4 + $0x10] sm:$0xf] %v407_v42  ;;  %v150_v7 = vsel %vm3160_vm5, %v145_v54, %v149_v29  ;;  %v155_v13 = vrot.slane %v154_v58, 4  ;;  %v2272_v26 = vld [vmem:[#allocation4 + $0x48] sm:$0xf] }
  0x27   :  { %2973 = vmatpush.bf16.msra.mxu1 %v2839_v36  ;;  %2974 = vmatpush.bf16.msra.mxu2 %v2839_v36  ;;  %385 = vst [vmem:[#allocation4 + $0x54] sm:$0xf] %v319_v43  ;;  %v2273_v42 = vor.u32 %v2789_v28, %v2272_v26  ;;  %v2865_v29 = vld [vmem:[#allocation5 + $0xd0] sm:$0xff]  ;;  %v2855_v26 = vld [vmem:[#allocation5 + $0x80] sm:$0xff]  ;;  %vm601_vm9 = vsmask.f32 1280 }
  0x28   :  { %2975 = vmatpush.bf16.msra.mxu3 %v2839_v36  ;;  %1763 = vmatpush.bf16.msra.mxu0 %v2839_v36  ;;  %v2877_v36 = vld [vmem:[#allocation5 + $0x130] sm:$0xff]  ;;  %v322_v48 = vsel %vm3146_vm2, %v320_v38, %v321_v39  ;;  %367 = vst [vmem:[#allocation4 + $0x74] sm:$0xf] %v319_v43  ;;  %v2874_v43 = vld [vmem:[#allocation5 + $0x118] sm:$0xff]  ;;  %v2887_v27 = vld [vmem:[#allocation5 + $0x180] sm:$0xff]  ;;  %vm508_vm12 = vcmask 1041408  }
  0x29   :  { %386 = vst [vmem:[#allocation4 + $0x78] sm:$0xf] %v322_v48  ;;  %v2849_v54 = vld [vmem:[#allocation5 + $0x50] sm:$0xff]  ;;  %vm602_vm10 = vsmask.f32 5392  ;;  %vm509_vm13 = vcmask 1045508  }
  0x2a   :  { %1774 = vmatmul.bf16.vlgmr.msra.gmra.mxu1 %v2309_v51  ;;  %1784 = vmatmul.bf16.vlgmr.msra.gmra.mxu2 %v2381_v62  ;;  %v3218_v51 = vshll.u32 %v3094_v2, 16  ;;  %v3225_v62 = vshll.u32 %v3096_v3, 16  ;;  %368 = vst [vmem:[#allocation4 + $0x98] sm:$0xf] %v322_v48  ;;  %v324_v48 = vrot.slane %v3120_v14, 5  ;;  %v2873_v58 = vld [vmem:[#allocation5 + $0x110] sm:$0xff]  ;;  %vm3462_vm11 = vmor %vm601_vm9, %vm602_vm10 }
  0x2b   :  { %1844 = vmatpush.bf16.msrb.mxu2 %v2862_v52  ;;  %1800 = vmatpush.bf16.msrb.mxu1 %v2854_v56  ;;  %v2852_v52 = vld [vmem:[#allocation5 + $0x68] sm:$0xff]  ;;  %277 = vst [vmem:[#allocation4 + $0x4c] sm:$0xf] %v150_v7  ;;  %v2777_v28 = vld [vmem:[#allocation4 + $0xc] sm:$0xf]  ;;  %vm3471_vm14 = vmor %vm508_vm12, %vm509_vm13  ;;  %vm710_vm15 = vcmask 1040384  }
  0x2c   :  { %1888 = vmatpush.bf16.msrb.mxu3 %v2870_v47  ;;  %1764 = vmatmul.bf16.vlgmr.msra.gmra.mxu0 %v2237_v63  ;;  %v412_v47 = vsel %vm3194_vm8, %v408_v37, %v3198_v30  ;;  %v2876_v56 = vld [vmem:[#allocation5 + $0x128] sm:$0xff]  ;;  %v159_v59 = vrot.slane %v3218_v51, 5  ;;  %v2851_v63 = vld [vmem:[#allocation5 + $0x60] sm:$0xff]  ;;  %v420_v25 = vrot.slane %v3225_v62, 6  ;;  %vm711_vm0 = vcmask 1044484  }
  0x2d   :  { %1932 = vmatpush.bf16.msrb.mxu0 %v2878_v10  ;;  %1794 = vmatmul.bf16.vlgmr.msra.gmra.mxu3 %v2453_v12  ;;  %495 = vst [vmem:[#allocation4 + $0x34] sm:$0xf] %v412_v47  ;;  %v3230_v10 = vshrl.u32 %v3096_v3, 16  ;;  %v2875_v12 = vld [vmem:[#allocation5 + $0x120] sm:$0xff]  ;;  %v2857_v47 = vld [vmem:[#allocation5 + $0x90] sm:$0xff]  ;;  %v2864_v7 = vld [vmem:[#allocation5 + $0xc8] sm:$0xff] }
  0x2e   :  { %v160_v31 = vsel %vm3160_vm5, %v155_v13, %v159_v59  ;;  %vm3481_vm1 = vmor %vm710_vm15, %vm711_vm0 }
  0x2f   :  { %1845 = vmatpush.bf16.msrb.mxu2 %v2861_v21  ;;  %1801 = vmatpush.bf16.msrb.mxu1 %v2853_v33  ;;  %v2825_v21 = vld [vmem:[#allocation4 + $0x188] sm:$0xf0]  ;;  %v419_v24 = vrot.slane %v3230_v10, 5  ;;  %v2866_v33 = vld [vmem:[#allocation5 + $0xd8] sm:$0xff]  ;;  %278 = vst [vmem:[#allocation4 + $0x70] sm:$0xf] %v160_v31 }
  0x30   :  { %1889 = vmatpush.bf16.msrb.mxu3 %v2869_v18  ;;  %v415_v18 = vrot.slane %v3218_v51, 6  ;;  %v2417_v37 = vor.u32 %v2825_v21, %v2416_v6  ;;  %v3258_v6 = vshll.u32 %v3120_v14, 16 }
  0x31   :  { %1933 = vmatpush.bf16.msrb.mxu0 %v2877_v36  ;;  %v3241_v35 = vor.u32 %v420_v25, %v419_v24  ;;  %v2345_v36 = vor.u32 %v2807_v1, %v2344_v0  ;;  %v164_v0 = vor.u32 %v163_v49, %v159_v59  ;;  %v2863_v25 = vld [vmem:[#allocation5 + $0xc0] sm:$0xff]  ;;  %v2902_v49 = vld [vmem:[#allocation5 + $0x1f8] sm:$0xff] }
  0x32   :  { %v416_v30 = vor.u32 %v415_v18, %v414_v17  ;;  %v2848_v17 = vld [vmem:[#allocation5 + $0x48] sm:$0xff]  ;;  %v179_v31 = vrot.slane %v3258_v6, 5 }
  0x33   :  { %1846 = vmatpush.bf16.msrb.mxu2 %v2860_v41  ;;  %1802 = vmatpush.bf16.msrb.mxu1 %v2852_v52  ;;  %v2850_v41 = vld [vmem:[#allocation5 + $0x58] sm:$0xff]  ;;  %v169_v52 = vrot.slane %v3225_v62, 5  ;;  %v2872_v18 = vld [vmem:[#allocation5 + $0x108] sm:$0xff]  ;;  %v165_v21 = vrot.slane %v164_v0, 4 }
  0x34   :  { %1890 = vmatpush.bf16.msrb.mxu3 %v2868_v40  ;;  %v417_v38 = vsel %vm3194_vm8, %v413_v16, %v416_v30  ;;  %v418_v40 = vrot.slane %v416_v30, 4  ;;  %v3266_v16 = vshll.u32 %v3122_v15, 16  ;;  %v3274_v30 = vshrl.u32 %v3122_v15, 16  ;;  %v2782_v0 = vld [vmem:[#allocation4 + $0x30] sm:$0xf0] }
  0x35   :  { %1934 = vmatpush.bf16.msrb.mxu0 %v2876_v56  ;;  %496 = vst [vmem:[#allocation4 + $0x58] sm:$0xf] %v417_v38  ;;  %v323_v56 = vrot.slane %v321_v39, 4  ;;  %v3263_v39 = vshrl.u32 %v3120_v14, 16  ;;  %v170_v38 = vsel %vm3160_vm5, %v165_v21, %v169_v52  ;;  %v2893_v21 = vld [vmem:[#allocation5 + $0x1b0] sm:$0xff] }
  0x36   :  { %v422_v46 = vsel %vm3194_vm8, %v418_v40, %v3241_v35  ;;  %v423_v40 = vrot.slane %v3241_v35, 4  ;;  %279 = vst [vmem:[#allocation4 + $0x94] sm:$0xf] %v170_v38  ;;  %v2871_v35 = vld [vmem:[#allocation5 + $0x100] sm:$0xff] }
  0x37   :  { %1847 = vmatpush.bf16.msrb.mxu2 %v2859_v57  ;;  %1803 = vmatpush.bf16.msrb.mxu1 %v2851_v63  ;;  %497 = vst [vmem:[#allocation4 + $0x7c] sm:$0xf] %v422_v46  ;;  %v326_v57 = vrot.slane %v324_v48, 4  ;;  %v327_v63 = vrot.slane %v3122_v15, 5  ;;  %v325_v13 = vsel %vm3146_vm2, %v323_v56, %v324_v48  ;;  %v2781_v46 = vld [vmem:[#allocation4 + $0x28] sm:$0xf0] }
  0x38   :  { %1891 = vmatpush.bf16.msrb.mxu3 %v2867_v53  ;;  %v173_v53 = vrot.slane %v3230_v10, 4  ;;  %387 = vst [vmem:[#allocation4 + $0x9c] sm:$0xf] %v325_v13  ;;  %v2244_v48 = vld [vmem:[#allocation4 + $0x8] sm:$0xf] }
  0x39   :  { %1935 = vmatpush.bf16.msrb.mxu0 %v2875_v12  ;;  %v2856_v12 = vld [vmem:[#allocation5 + $0x88] sm:$0xff]  ;;  %v328_v59 = vsel %vm3146_vm2, %v326_v57, %v327_v63  ;;  %369 = vst [vmem:[#allocation4 + $0xbc] sm:$0xf] %v325_v13  ;;  %v329_v38 = vrot.slane %v327_v63, 4  ;;  %v3309_v63 = vshrl.u32 %v3098_v4, 16 }
  0x3a   :  { %1779 = vmatmul.bf16.gmra.mxu1 %v2345_v36  ;;  %1789 = vmatmul.bf16.gmra.mxu2 %v2417_v37  ;;  %v174_v1 = vor.u32 %v173_v53, %v169_v52  ;;  %388 = vst [vmem:[#allocation4 + $0xc0] sm:$0xf] %v328_v59  ;;  %v2246_v36 = vld [vmem:[#allocation4 + $0x2c] sm:$0xf0]  ;;  %v429_v52 = vrot.slane %v3274_v30, 5 }
  0x3b   :  { %1848 = vmatpush.bf16.msrb.mxu2 %v2858_v34  ;;  %1804 = vmatpush.bf16.msrb.mxu1 %v2850_v41  ;;  %v425_v34 = vrot.slane %v3258_v6, 6  ;;  %v2894_v37 = vld [vmem:[#allocation5 + $0x1b8] sm:$0xff]  ;;  %v430_v41 = vrot.slane %v3266_v16, 6  ;;  %370 = vst [vmem:[#allocation4 + $0xe0] sm:$0xf] %v328_v59  ;;  %v2249_v57 = vor.u32 %v2777_v28, %v2246_v36  ;;  %v330_v28 = vrot.slane %v3098_v4, 5 }
  0x3c   :  { %1892 = vmatpush.bf16.msrb.mxu3 %v2866_v33  ;;  %1769 = vmatmul.bf16.gmra.mxu0 %v2273_v42  ;;  %v175_v24 = vrot.slane %v174_v1, 4  ;;  %v424_v33 = vrot.slane %v3263_v39, 5  ;;  %v2847_v42 = vld [vmem:[#allocation5 + $0x40] sm:$0xff]  ;;  %v2238_v53 = vld [vmem:[#allocation4 + $0x24] sm:$0xf0]  ;;  %v193_v36 = vrot.slane %v3274_v30, 4 }
  0x3d   :  { %1936 = vmatpush.bf16.msrb.mxu0 %v2874_v43  ;;  %v2776_v43 = vld [vmem:[#allocation4 + $0x4] sm:$0xf]  ;;  %v3289_v1 = vor.u32 %v430_v41, %v429_v52  ;;  %v3312_v52 = vshll.u32 %v3101_v5, 16 }
  0x3e   :  { %v2241_v13 = vor.u32 %v2776_v43, %v2238_v53  ;;  %v2900_v41 = vld [vmem:[#allocation5 + $0x1e8] sm:$0xff] }
  0x3f   :  { %1849 = vmatpush.bf16.msrb.mxu2 %v2857_v47  ;;  %1805 = vmatpush.bf16.msrb.mxu1 %v2849_v54  ;;  %v426_v47 = vor.u32 %v425_v34, %v424_v33  ;;  %v183_v33 = vrot.slane %v3263_v39, 4  ;;  %v189_v34 = vrot.slane %v3266_v16, 5 }
  0x40   :  { %1893 = vmatpush.bf16.msrb.mxu3 %v2865_v29  ;;  %v180_v29 = vsel %vm3160_vm5, %v175_v24, %v179_v31  ;;  %v2901_v24 = vld [vmem:[#allocation5 + $0x1f0] sm:$0xff] }
  0x41   :  { %1937 = vmatpush.bf16.msrb.mxu0 %v2873_v58  ;;  %280 = vst [vmem:[#allocation4 + $0xb8] sm:$0xf] %v180_v29  ;;  %v427_v54 = vsel %vm3194_vm8, %v423_v40, %v426_v47  ;;  %v428_v56 = vrot.slane %v426_v47, 4  ;;  %v2252_v58 = vld [vmem:[#allocation4 + $0x10] sm:$0xf]  ;;  %v332_v40 = vrot.slane %v330_v28, 4  ;;  %v184_v43 = vor.u32 %v183_v33, %v179_v31 }
  0x42   :  { %498 = vst [vmem:[#allocation4 + $0xa0] sm:$0xf] %v427_v54  ;;  %v3304_v29 = vshll.u32 %v3098_v4, 16  ;;  %v2884_v47 = vld [vmem:[#allocation5 + $0x168] sm:$0xff]  ;;  %v2790_v33 = vld [vmem:[#allocation4 + $0x70] sm:$0xf0] }
  0x43   :  { %1850 = vmatpush.bf16.msrb.mxu2 %v2856_v12  ;;  %1806 = vmatpush.bf16.msrb.mxu1 %v2848_v17  ;;  %v2910_v12 = vld [vmem:[#allocation5 + $0x238] sm:$0xff]  ;;  %v2245_v17 = vor.u32 %v2781_v46, %v2244_v48  ;;  %v432_v59 = vsel %vm3194_vm8, %v428_v56, %v3289_v1  ;;  %v194_v46 = vor.u32 %v193_v36, %v189_v34  ;;  %v2908_v48 = vld [vmem:[#allocation5 + $0x228] sm:$0xff]  ;;  %v185_v53 = vrot.slane %v184_v43, 4 }
  0x44   :  { %1894 = vmatpush.bf16.msrb.mxu3 %v2864_v7  ;;  %v2886_v7 = vld [vmem:[#allocation5 + $0x178] sm:$0xff]  ;;  %499 = vst [vmem:[#allocation4 + $0xc4] sm:$0xf] %v432_v59 }
  0x45   :  { %1938 = vmatpush.bf16.msrb.mxu0 %v2872_v18  ;;  %v2253_v18 = vor.u32 %v2782_v0, %v2252_v58  ;;  %v195_v54 = vrot.slane %v194_v46, 4  ;;  %v2786_v56 = vld [vmem:[#allocation4 + $0x54] sm:$0xf]  ;;  %v199_v58 = vrot.slane %v3304_v29, 5  ;;  %v434_v0 = vrot.slane %v3309_v63, 5 }
  0x47   :  { %1851 = vmatpush.bf16.msrb.mxu2 %v2855_v26  ;;  %1807 = vmatpush.bf16.msrb.mxu1 %v2847_v42  ;;  %v2909_v26 = vld [vmem:[#allocation5 + $0x230] sm:$0xff]  ;;  %v333_v42 = vrot.slane %v3101_v5, 5 }
  0x48   :  { %1895 = vmatpush.bf16.msrb.mxu3 %v2863_v25  ;;  %v2885_v25 = vld [vmem:[#allocation5 + $0x170] sm:$0xff] }
  0x49   :  { %1939 = vmatpush.bf16.msrb.mxu0 %v2871_v35  ;;  %v3315_v35 = vshrl.u32 %v3101_v5, 16  ;;  %v334_v31 = vsel %vm3146_vm2, %v332_v40, %v333_v42  ;;  %v2288_v40 = vld [vmem:[#allocation4 + $0x58] sm:$0xf] }
  0x4a   :  { %1808 = vmatmul.bf16.vlgmr.msrb.gmra.mxu1 %v2241_v13  ;;  %1852 = vmatmul.bf16.vlgmr.msrb.gmra.mxu2 %v2245_v17  ;;  %390 = vst [vmem:[#allocation4 + $0x108] sm:$0xf] %v334_v31  ;;  %v190_v13 = vsel %vm3160_vm5, %v185_v53, %v189_v34  ;;  %v433_v17 = vrot.slane %v3289_v1, 4  ;;  %v2274_v34 = vld [vmem:[#allocation4 + $0x6c] sm:$0xf0]  ;;  %v203_v53 = vrot.slane %v3309_v63, 4 }
  0x4b   :  { %2020 = vmatpush.bf16.msra.mxu2 %v2894_v37  ;;  %1896 = vmatmul.bf16.vlgmr.msrb.gmra.mxu3 %v2249_v57  ;;  %v2892_v37 = vld [vmem:[#allocation5 + $0x1a8] sm:$0xff]  ;;  %v2891_v57 = vld [vmem:[#allocation5 + $0x1a0] sm:$0xff]  ;;  %v439_v59 = vrot.slane %v3315_v35, 5  ;;  %372 = vst [vmem:[#allocation4 + $0x128] sm:$0xf] %v334_v31  ;;  %v336_v31 = vrot.slane %v3126_v19, 5 }
  0x4c   :  { %2064 = vmatpush.bf16.msra.mxu3 %v2902_v49  ;;  %1976 = vmatpush.bf16.msra.mxu1 %v2886_v7  ;;  %v331_v49 = vsel %vm3146_vm2, %v329_v38, %v330_v28  ;;  %v435_v7 = vrot.slane %v3304_v29, 6  ;;  %v2785_v28 = vld [vmem:[#allocation4 + $0x4c] sm:$0xf]  ;;  %281 = vst [vmem:[#allocation4 + $0xdc] sm:$0xf] %v190_v13 }
  0x4d   :  { %2108 = vmatpush.bf16.msra.mxu0 %v2910_v12  ;;  %389 = vst [vmem:[#allocation4 + $0xe4] sm:$0xf] %v331_v49  ;;  %v2899_v12 = vld [vmem:[#allocation5 + $0x1e0] sm:$0xff]  ;;  %v2277_v46 = vor.u32 %v2785_v28, %v2274_v34  ;;  %v338_v13 = vrot.slane %v336_v31, 4  ;;  %v3354_v28 = vshll.u32 %v3128_v20, 16 }
  0x4e   :  { %1940 = vmatmul.bf16.vlgmr.msrb.gmra.mxu0 %v2253_v18  ;;  %371 = vst [vmem:[#allocation4 + $0x104] sm:$0xf] %v331_v49  ;;  %v440_v18 = vrot.slane %v3312_v52, 6  ;;  %v2883_v49 = vld [vmem:[#allocation5 + $0x160] sm:$0xff] }
  0x4f   :  { %2021 = vmatpush.bf16.msra.mxu2 %v2893_v21  ;;  %v2282_v21 = vld [vmem:[#allocation4 + $0x74] sm:$0xf0] }
  0x50   :  { %2065 = vmatpush.bf16.msra.mxu3 %v2901_v24  ;;  %1977 = vmatpush.bf16.msra.mxu1 %v2885_v25  ;;  %v2280_v24 = vld [vmem:[#allocation4 + $0x50] sm:$0xf]  ;;  %v200_v25 = vsel %vm3160_vm5, %v195_v54, %v199_v58  ;;  %v3331_v36 = vor.u32 %v440_v18, %v439_v59  ;;  %v2285_v38 = vor.u32 %v2786_v56, %v2282_v21  ;;  %v209_v54 = vrot.slane %v3312_v52, 5 }
  0x51   :  { %2109 = vmatpush.bf16.msra.mxu0 %v2909_v26  ;;  %v436_v26 = vor.u32 %v435_v7, %v434_v0  ;;  %282 = vst [vmem:[#allocation4 + $0x100] sm:$0xf] %v200_v25  ;;  %v213_v56 = vrot.slane %v3315_v35, 4  ;;  %v2907_v0 = vld [vmem:[#allocation5 + $0x220] sm:$0xff]  ;;  %v2890_v7 = vld [vmem:[#allocation5 + $0x198] sm:$0xff]  ;;  %v339_v18 = vrot.slane %v3128_v20, 5  ;;  %v204_v21 = vor.u32 %v203_v53, %v199_v58 }
  0x52   :  { %v2882_v59 = vld [vmem:[#allocation5 + $0x158] sm:$0xff]  ;;  %v3349_v25 = vshrl.u32 %v3126_v19, 16 }
  0x53   :  { %2022 = vmatpush.bf16.msra.mxu2 %v2892_v37  ;;  %v437_v1 = vsel %vm3194_vm8, %v433_v17, %v436_v26  ;;  %v438_v37 = vrot.slane %v436_v26, 4  ;;  %v2898_v17 = vld [vmem:[#allocation5 + $0x1d8] sm:$0xff]  ;;  %v340_v58 = vsel %vm3146_vm2, %v338_v13, %v339_v18  ;;  %v205_v34 = vrot.slane %v204_v21, 4 }
  0x54   :  { %2066 = vmatpush.bf16.msra.mxu3 %v2900_v41  ;;  %1978 = vmatpush.bf16.msra.mxu1 %v2884_v47  ;;  %v2791_v41 = vld [vmem:[#allocation4 + $0x78] sm:$0xf0]  ;;  %500 = vst [vmem:[#allocation4 + $0xe8] sm:$0xf] %v437_v1  ;;  %v2281_v47 = vor.u32 %v2790_v33, %v2280_v24  ;;  %v214_v24 = vor.u32 %v213_v56, %v209_v54 }
  0x55   :  { %2110 = vmatpush.bf16.msra.mxu0 %v2908_v48  ;;  %v442_v43 = vsel %vm3194_vm8, %v438_v37, %v3331_v36  ;;  %v2289_v48 = vor.u32 %v2791_v41, %v2288_v40  ;;  %392 = vst [vmem:[#allocation4 + $0x150] sm:$0xf] %v340_v58  ;;  %v450_v41 = vrot.slane %v3354_v28, 6 }
  0x56   :  { %501 = vst [vmem:[#allocation4 + $0x10c] sm:$0xf] %v442_v43  ;;  %v215_v1 = vrot.slane %v214_v24, 4  ;;  %v2795_v43 = vld [vmem:[#allocation4 + $0x9c] sm:$0xf] }
  0x57   :  { %2023 = vmatpush.bf16.msra.mxu2 %v2891_v57  ;;  %v3343_v57 = vshll.u32 %v3126_v19, 16  ;;  %374 = vst [vmem:[#allocation4 + $0x170] sm:$0xf] %v340_v58  ;;  %v342_v58 = vrot.slane %v3112_v9, 5 }
  0x58   :  { %2067 = vmatpush.bf16.msra.mxu3 %v2899_v12  ;;  %1979 = vmatpush.bf16.msra.mxu1 %v2883_v49  ;;  %v335_v12 = vrot.slane %v333_v42, 4  ;;  %v3357_v42 = vshrl.u32 %v3128_v20, 16  ;;  %v2316_v49 = vld [vmem:[#allocation4 + $0x98] sm:$0xf] }
  0x59   :  { %2111 = vmatpush.bf16.msra.mxu0 %v2907_v0  ;;  %v445_v33 = vrot.slane %v3343_v57, 6  ;;  %v219_v37 = vrot.slane %v3343_v57, 5  ;;  %v2794_v0 = vld [vmem:[#allocation4 + $0x94] sm:$0xf] }
  0x5a   :  { %1813 = vmatmul.bf16.gmra.mxu1 %v2277_v46  ;;  %1857 = vmatmul.bf16.gmra.mxu2 %v2281_v47  ;;  %v337_v26 = vsel %vm3146_vm2, %v335_v12, %v336_v31  ;;  %v449_v40 = vrot.slane %v3357_v42, 5  ;;  %v210_v46 = vsel %vm3160_vm5, %v205_v34, %v209_v54  ;;  %v443_v47 = vrot.slane %v3331_v36, 4  ;;  %v2310_v12 = vld [vmem:[#allocation4 + $0xb4] sm:$0xf0]  ;;  %v2324_v36 = vld [vmem:[#allocation4 + $0xa0] sm:$0xf] }
  0x5b   :  { %1901 = vmatmul.bf16.gmra.mxu3 %v2285_v38  ;;  %2024 = vmatpush.bf16.msra.mxu2 %v2890_v7  ;;  %391 = vst [vmem:[#allocation4 + $0x12c] sm:$0xf] %v337_v26  ;;  %v444_v38 = vrot.slane %v3349_v25, 5  ;;  %v220_v31 = vsel %vm3160_vm5, %v215_v1, %v219_v37  ;;  %v2799_v7 = vld [vmem:[#allocation4 + $0xb8] sm:$0xf0]  ;;  %v2313_v24 = vor.u32 %v2794_v0, %v2310_v12  ;;  %v223_v34 = vrot.slane %v3349_v25, 4 }
  0x5c   :  { %2068 = vmatpush.bf16.msra.mxu3 %v2898_v17  ;;  %1980 = vmatpush.bf16.msra.mxu1 %v2882_v59  ;;  %373 = vst [vmem:[#allocation4 + $0x14c] sm:$0xf] %v337_v26  ;;  %v3371_v56 = vor.u32 %v450_v41, %v449_v40  ;;  %v2800_v59 = vld [vmem:[#allocation4 + $0xc0] sm:$0xf0]  ;;  %v2317_v26 = vor.u32 %v2799_v7, %v2316_v49  ;;  %v229_v1 = vrot.slane %v3354_v28, 5  ;;  %v3383_v40 = vshll.u32 %v3112_v9, 16 }
  0x5d   :  { %v446_v53 = vor.u32 %v445_v33, %v444_v38  ;;  %283 = vst [vmem:[#allocation4 + $0x124] sm:$0xf] %v210_v46  ;;  %v2325_v33 = vor.u32 %v2800_v59, %v2324_v36  ;;  %v233_v38 = vrot.slane %v3357_v42, 4  ;;  %v2906_v41 = vld [vmem:[#allocation5 + $0x218] sm:$0xff]  ;;  %v341_v46 = vrot.slane %v339_v18, 4  ;;  %v2881_v49 = vld [vmem:[#allocation5 + $0x150] sm:$0xff] }
  0x5e   :  { %1945 = vmatmul.bf16.gmra.mxu0 %v2289_v48  ;;  %v2318_v48 = vld [vmem:[#allocation4 + $0xbc] sm:$0xf0]  ;;  %284 = vst [vmem:[#allocation4 + $0x148] sm:$0xf] %v220_v31  ;;  %v345_v31 = vrot.slane %v3114_v11, 5  ;;  %v3387_v7 = vshrl.u32 %v3112_v9, 16 }
  0x5f   :  { %v447_v13 = vsel %vm3194_vm8, %v443_v47, %v446_v53  ;;  %v448_v54 = vrot.slane %v446_v53, 4  ;;  %v2321_v17 = vor.u32 %v2795_v43, %v2318_v48  ;;  %v2889_v43 = vld [vmem:[#allocation5 + $0x190] sm:$0xff]  ;;  %v344_v47 = vrot.slane %v342_v58, 4  ;;  %2112 = vmatpush.bf16.msra.mxu0 %v2906_v41  ;;  %v2352_v41 = vld [vmem:[#allocation4 + $0xe0] sm:$0xf] }
  0x60   :  { %502 = vst [vmem:[#allocation4 + $0x130] sm:$0xf] %v447_v13  ;;  %v2897_v48 = vld [vmem:[#allocation5 + $0x1d0] sm:$0xff]  ;;  %v224_v53 = vor.u32 %v223_v34, %v219_v37  ;;  %v234_v0 = vor.u32 %v233_v38, %v229_v1  ;;  %2025 = vmatpush.bf16.msra.mxu2 %v2889_v43  ;;  %v343_v12 = vsel %vm3146_vm2, %v341_v46, %v342_v58  ;;  %v3392_v13 = vshll.u32 %v3114_v11, 16 }
  0x61   :  { %v452_v21 = vsel %vm3194_vm8, %v448_v54, %v3371_v56  ;;  %v3395_v18 = vshrl.u32 %v3114_v11, 16  ;;  %v455_v54 = vrot.slane %v3383_v40, 6  ;;  %2069 = vmatpush.bf16.msra.mxu3 %v2897_v48  ;;  %1981 = vmatpush.bf16.msra.mxu1 %v2881_v49  ;;  %v346_v37 = vsel %vm3146_vm2, %v344_v47, %v345_v31  ;;  %393 = vst [vmem:[#allocation4 + $0x174] sm:$0xf] %v343_v12  ;;  %v2354_v38 = vld [vmem:[#allocation4 + $0x104] sm:$0xf0] }
  0x62   :  { %503 = vst [vmem:[#allocation4 + $0x154] sm:$0xf] %v452_v21  ;;  %v235_v36 = vrot.slane %v234_v0, 4  ;;  %v239_v59 = vrot.slane %v3383_v40, 5  ;;  %v454_v21 = vrot.slane %v3387_v7, 5  ;;  %v453_v34 = vrot.slane %v3371_v56, 4 }
  0x63   :  { %394 = vst [vmem:[#allocation4 + $0x198] sm:$0xf] %v346_v37  ;;  %v2803_v48 = vld [vmem:[#allocation4 + $0xdc] sm:$0xf]  ;;  %v2808_v49 = vld [vmem:[#allocation4 + $0x100] sm:$0xf0] }
  0x64   :  { %375 = vst [vmem:[#allocation4 + $0x194] sm:$0xf] %v343_v12  ;;  %v240_v43 = vsel %vm3160_vm5, %v235_v36, %v239_v59  ;;  %v456_v46 = vor.u32 %v455_v54, %v454_v21  ;;  %v2360_v56 = vld [vmem:[#allocation4 + $0xe8] sm:$0xf]  ;;  %v2353_v36 = vor.u32 %v2808_v49, %v2352_v41  ;;  %v2880_v41 = vld [vmem:[#allocation5 + $0x148] sm:$0xff] }
  0x65   :  { %376 = vst [vmem:[#allocation4 + $0x1b8] sm:$0xf] %v346_v37  ;;  %1982 = vmatpush.bf16.msra.mxu1 %v2880_v41  ;;  %v2388_v41 = vld [vmem:[#allocation4 + $0x128] sm:$0xf] }
  0x66   :  { %286 = vst [vmem:[#allocation4 + $0x190] sm:$0xf] %v240_v43  ;;  %v457_v0 = vsel %vm3194_vm8, %v453_v34, %v456_v46  ;;  %v243_v34 = vrot.slane %v3387_v7, 4  ;;  %v2896_v43 = vld [vmem:[#allocation5 + $0x1c8] sm:$0xff] }
  0x67   :  { %504 = vst [vmem:[#allocation4 + $0x178] sm:$0xf] %v457_v0  ;;  %v249_v0 = vrot.slane %v3392_v13, 5  ;;  %2070 = vmatpush.bf16.msra.mxu3 %v2896_v43 }
  0x6a   :  { %1818 = vmatmul.bf16.gmra.mxu1 %v2313_v24  ;;  %1862 = vmatmul.bf16.gmra.mxu2 %v2317_v26  ;;  %v459_v24 = vrot.slane %v3395_v18, 5  ;;  %v460_v26 = vrot.slane %v3392_v13, 6 }
  0x6b   :  { %1906 = vmatmul.bf16.gmra.mxu3 %v2321_v17  ;;  %v225_v17 = vrot.slane %v224_v53, 4  ;;  %v2346_v53 = vld [vmem:[#allocation4 + $0xfc] sm:$0xf0] }
  0x6c   :  { %v3409_v47 = vor.u32 %v460_v26, %v459_v24  ;;  %v2349_v54 = vor.u32 %v2803_v48, %v2346_v53  ;;  %v3416_v24 = vld [vmem:[#allocation2 + $0x38] sm:$0xf]  ;;  %v244_v53 = vor.u32 %v243_v34, %v239_v59 }
  0x6d   :  { %v230_v58 = vsel %vm3160_vm5, %v225_v17, %v229_v1  ;;  %v458_v1 = vrot.slane %v456_v46, 4  ;;  %v2809_v17 = vld [vmem:[#allocation4 + $0x108] sm:$0xf0]  ;;  %v348_v26 = vrot.slane %v3416_v24, 5  ;;  %v347_v46 = vrot.slane %v345_v31, 4 }
  0x6e   :  { %1950 = vmatmul.bf16.gmra.mxu0 %v2325_v33  ;;  %v2804_v33 = vld [vmem:[#allocation4 + $0xe4] sm:$0xf]  ;;  %285 = vst [vmem:[#allocation4 + $0x16c] sm:$0xf] %v230_v58  ;;  %v2361_v21 = vor.u32 %v2809_v17, %v2360_v56  ;;  %v2905_v58 = vld [vmem:[#allocation5 + $0x210] sm:$0xff]  ;;  %v3428_v56 = vshll.u32 %v3416_v24, 16 }
  0x6f   :  { %v2357_v12 = vor.u32 %v2804_v33, %v2354_v38  ;;  %v462_v37 = vsel %vm3194_vm8, %v458_v1, %v3409_v47  ;;  %v3419_v33 = vld [vmem:[#allocation2 + $0x3c] sm:$0xf]  ;;  %v2888_v38 = vld [vmem:[#allocation5 + $0x188] sm:$0xff]  ;;  %v379_v48 = vrot.slane %v348_v26, 4  ;;  %2113 = vmatpush.bf16.msra.mxu0 %v2905_v58  ;;  %v253_v1 = vrot.slane %v3395_v18, 4 }
  0x70   :  { %505 = vst [vmem:[#allocation4 + $0x19c] sm:$0xf] %v462_v37  ;;  %v380_v49 = vrot.slane %v3419_v33, 5  ;;  %2026 = vmatpush.bf16.msra.mxu2 %v2888_v38  ;;  %v3748_v31 = vshrl.u32 %v3416_v24, 16  ;;  %v3747_v17 = vshrl.u32 %v3419_v33, 16  ;;  %v245_v37 = vrot.slane %v244_v53, 4 }
  0x71   :  { %v467_v58 = vrot.slane %v3428_v56, 6  ;;  %v463_v43 = vrot.slane %v3409_v47, 4  ;;  %v2812_v53 = vld [vmem:[#allocation4 + $0x124] sm:$0xf] }
  0x72   :  { %v381_v59 = vsel %vm3146_vm2, %v379_v48, %v380_v49  ;;  %v474_v34 = vrot.slane %v3747_v17, 5  ;;  %v250_v32 = vsel %vm3160_vm5, %v245_v37, %v249_v0  ;;  %v2390_v48 = vld [vmem:[#allocation4 + $0x14c] sm:$0xf0]  ;;  %v2382_v17 = vld [vmem:[#allocation4 + $0x144] sm:$0xf0] }
  0x73   :  { %396 = vst [vmem:[#allocation4 + $0x1e0] sm:$0xf] %v381_v59 }
  0x74   :  { %287 = vst [vmem:[#allocation4 + $0x1b4] sm:$0xf] %v250_v32  ;;  %v604_v32 = vrot.slane %v3169_v50, 6  ;;  %2027 = vmatpush.bf16.msra.mxu2 %v2887_v27  ;;  %v2432_v27 = vld [vmem:[#allocation4 + $0x178] sm:$0xf] }
  0x7a   :  { %1823 = vmatmul.bf16.gmra.mxu1 %v2349_v54  ;;  %1867 = vmatmul.bf16.gmra.mxu2 %v2353_v36  ;;  %v254_v54 = vor.u32 %v253_v1, %v249_v0  ;;  %v2813_v36 = vld [vmem:[#allocation4 + $0x12c] sm:$0xf] }
  0x7b   :  { %1911 = vmatmul.bf16.gmra.mxu3 %v2357_v12  ;;  %v349_v12 = vsel %vm3146_vm2, %v347_v46, %v348_v26  ;;  %v466_v26 = vrot.slane %v3748_v31, 5  ;;  %v475_v46 = vshll.u32 %v3419_v33, 16  ;;  %v2817_v1 = vld [vmem:[#allocation4 + $0x148] sm:$0xf0]  ;;  %v2393_v37 = vor.u32 %v2813_v36, %v2390_v48  ;;  %v2818_v31 = vld [vmem:[#allocation4 + $0x150] sm:$0xf0] }
  0x7c   :  { %395 = vst [vmem:[#allocation4 + $0x1bc] sm:$0xf] %v349_v12  ;;  %v255_v38 = vrot.slane %v254_v54, 4  ;;  %v2396_v54 = vld [vmem:[#allocation4 + $0x130] sm:$0xf]  ;;  %v609_v36 = vrot.slane %v3179_v60, 7 }
  0x7d   :  { %377 = vst [vmem:[#allocation4 + $0x1dc] sm:$0xf] %v349_v12  ;;  %v468_v49 = vor.u32 %v467_v58, %v466_v26  ;;  %v477_v12 = vrot.slane %v475_v46, 6  ;;  %v2385_v26 = vor.u32 %v2812_v53, %v2382_v17  ;;  %v2389_v58 = vor.u32 %v2817_v1, %v2388_v41  ;;  %v2822_v53 = vld [vmem:[#allocation4 + $0x174] sm:$0xf] }
  0x7e   :  { %1955 = vmatmul.bf16.gmra.mxu0 %v2361_v21  ;;  %v259_v21 = vrot.slane %v3428_v56, 5  ;;  %v614_v17 = vrot.slane %v3218_v51, 7  ;;  %v516_v60 = vrot.slane %v3134_v23, 6  ;;  %v2895_v51 = vld [vmem:[#allocation5 + $0x1c0] sm:$0xff] }
  0x7f   :  { %v469_v0 = vsel %vm3194_vm8, %v463_v43, %v468_v49  ;;  %v470_v47 = vrot.slane %v468_v49, 4  ;;  %v478_v11 = vor.u32 %v477_v12, %v474_v34  ;;  %v2904_v43 = vld [vmem:[#allocation5 + $0x208] sm:$0xff]  ;;  %v613_v34 = vrot.slane %v3221_v55, 6  ;;  %v2426_v1 = vld [vmem:[#allocation4 + $0x194] sm:$0xf0]  ;;  %2071 = vmatpush.bf16.msra.mxu3 %v2895_v51 }
  0x80   :  { %v260_v59 = vsel %vm3160_vm5, %v255_v38, %v259_v21  ;;  %506 = vst [vmem:[#allocation4 + $0x1c0] sm:$0xf] %v469_v0  ;;  %v2397_v21 = vor.u32 %v2818_v31, %v2396_v54  ;;  %v605_v38 = vrot.slane %v3165_v45, 7  ;;  %2114 = vmatpush.bf16.msra.mxu0 %v2904_v43  ;;  %v2232_v0 = vrot.slane %v3107_v8, 10  ;;  %v2879_v54 = vld [vmem:[#allocation5 + $0x140] sm:$0xff] }
  0x81   :  { %288 = vst [vmem:[#allocation4 + $0x1d8] sm:$0xf] %v260_v59  ;;  %v479_v44 = vsel %vm3194_vm8, %v470_v47, %v478_v11  ;;  %v608_v59 = vrot.slane %v3182_v61, 6  ;;  %v3458_v31 = vor.u32 %v614_v17, %v613_v34  ;;  %v513_v61 = vrot.slane %v3132_v22, 6  ;;  %v2821_v43 = vld [vmem:[#allocation4 + $0x16c] sm:$0xf]  ;;  %1983 = vmatpush.bf16.msra.mxu1 %v2879_v54 }
  0x82   :  { %507 = vst [vmem:[#allocation4 + $0x1e4] sm:$0xf] %v479_v44  ;;  %v606_v48 = vor.u32 %v605_v38, %v604_v32  ;;  %v2826_v44 = vld [vmem:[#allocation4 + $0x190] sm:$0xf0]  ;;  %v2233_v8 = vrot.slane %v3132_v22, 11  ;;  %v522_v54 = vrot.slane %v3096_v3, 6 }
  0x83   :  { %v610_v11 = vor.u32 %v609_v36, %v608_v59  ;;  %v515_v47 = vrot.slane %v513_v61, 4  ;;  %v715_v59 = vrot.slane %v3134_v23, 7  ;;  %v2418_v34 = vld [vmem:[#allocation4 + $0x18c] sm:$0xf0] }
  0x84   :  { %v607_v50 = vrot.slane %v606_v48, 4  ;;  %v718_v48 = vrot.slane %v3094_v2, 7 }
  0x85   :  { %v612_v45 = vrot.slane %v610_v11, 4  ;;  %v517_v32 = vsel %vm3471_vm14, %v515_v47, %v516_v60  ;;  %v717_v17 = vrot.slane %v715_v59, 4  ;;  %v716_v22 = vsel %vm3481_vm1, %v2233_v8, %v715_v59  ;;  %v2462_v59 = vld [vmem:[#allocation4 + $0x1dc] sm:$0xf0] }
  0x86   :  { %v611_v41 = vsel %vm3462_vm11, %v607_v50, %v610_v11  ;;  %569 = vst [vmem:[#allocation4 + $0x38] sm:$0xf] %v517_v32  ;;  %v2429_v11 = vor.u32 %v2822_v53, %v2426_v1  ;;  %v2827_v50 = vld [vmem:[#allocation4 + $0x198] sm:$0xf0]  ;;  %v623_v53 = vrot.slane %v3263_v39, 6  ;;  %v624_v1 = vrot.slane %v3258_v6, 7 }
  0x87   :  { %v616_v49 = vsel %vm3462_vm11, %v612_v45, %v3458_v31  ;;  %696 = vst [vmem:[#allocation4 + $0x1c] sm:$0xf] %v611_v41  ;;  %v719_v23 = vsel %vm3481_vm1, %v717_v17, %v718_v48  ;;  %v2421_v45 = vor.u32 %v2821_v43, %v2418_v34  ;;  %v2433_v51 = vor.u32 %v2827_v50, %v2432_v27  ;;  %v2460_v34 = vld [vmem:[#allocation4 + $0x1b8] sm:$0xf] }
  0x88   :  { %697 = vst [vmem:[#allocation4 + $0x40] sm:$0xf] %v616_v49  ;;  %v619_v41 = vrot.slane %v3225_v62, 7  ;;  %v524_v39 = vrot.slane %v522_v54, 4  ;;  %v525_v6 = vrot.slane %v3120_v14, 6  ;;  %v724_v8 = vrot.slane %v3120_v14, 7 }
  0x89   :  { %587 = vst [vmem:[#allocation4 + $0x18] sm:$0xf] %v517_v32  ;;  %v720_v32 = vrot.slane %v718_v48, 4  ;;  %v2468_v14 = vld [vmem:[#allocation4 + $0x1c0] sm:$0xf] }
  0x8a   :  { %1828 = vmatmul.bf16.gmra.mxu1 %v2385_v26  ;;  %1872 = vmatmul.bf16.gmra.mxu2 %v2389_v58  ;;  %v519_v26 = vrot.slane %v3094_v2, 6  ;;  %v2424_v58 = vld [vmem:[#allocation4 + $0x170] sm:$0xf]  ;;  %770 = vst [vmem:[#allocation4 + $0x20] sm:$0xf] %v716_v22  ;;  %v618_v2 = vrot.slane %v3230_v10, 6  ;;  %v526_v43 = vsel %vm3471_vm14, %v524_v39, %v525_v6 }
  0x8b   :  { %1916 = vmatmul.bf16.gmra.mxu3 %v2393_v37  ;;  %v518_v37 = vrot.slane %v516_v60, 4  ;;  %v2903_v60 = vld [vmem:[#allocation5 + $0x200] sm:$0xff]  ;;  %771 = vst [vmem:[#allocation4 + $0x44] sm:$0xf] %v719_v23  ;;  %v2836_v50 = vld [vmem:[#allocation4 + $0x1e0] sm:$0xf0] }
  0x8c   :  { %2115 = vmatpush.bf16.msra.mxu0 %v2903_v60  ;;  %v620_v49 = vor.u32 %v619_v41, %v618_v2  ;;  %590 = vst [vmem:[#allocation4 + $0x84] sm:$0xf] %v526_v43  ;;  %v628_v60 = vrot.slane %v3274_v30, 6 }
  0x8d   :  { %v520_v36 = vsel %vm3471_vm14, %v518_v37, %v519_v26  ;;  %v625_v37 = vor.u32 %v624_v1, %v623_v53  ;;  %572 = vst [vmem:[#allocation4 + $0xa4] sm:$0xf] %v526_v43  ;;  %v634_v53 = vrot.slane %v3304_v29, 7 }
  0x8e   :  { %1960 = vmatmul.bf16.gmra.mxu0 %v2397_v21  ;;  %v514_v21 = vsel %vm3471_vm14, %v2232_v0, %v513_v61  ;;  %588 = vst [vmem:[#allocation4 + $0x3c] sm:$0xf] %v520_v36  ;;  %v2425_v61 = vor.u32 %v2826_v44, %v2424_v58  ;;  %v617_v0 = vrot.slane %v3458_v31, 4  ;;  %v622_v47 = vrot.slane %v620_v49, 4 }
  0x8f   :  { %568 = vst [vmem:[#allocation4 + $0x14] sm:$0xf] %v514_v21  ;;  %v521_v58 = vrot.slane %v519_v26, 4  ;;  %v721_v44 = vrot.slane %v3096_v3, 7  ;;  %v2831_v21 = vld [vmem:[#allocation4 + $0x1bc] sm:$0xf] }
  0x90   :  { %570 = vst [vmem:[#allocation4 + $0x5c] sm:$0xf] %v520_v36  ;;  %v621_v62 = vsel %vm3462_vm11, %v617_v0, %v620_v49  ;;  %v626_v10 = vsel %vm3462_vm11, %v622_v47, %v625_v37  ;;  %v2830_v26 = vld [vmem:[#allocation4 + $0x1b4] sm:$0xf]  ;;  %v2454_v3 = vld [vmem:[#allocation4 + $0x1d4] sm:$0xf0]  ;;  %v2465_v27 = vor.u32 %v2831_v21, %v2462_v59 }
  0x91   :  { %698 = vst [vmem:[#allocation4 + $0x64] sm:$0xf] %v621_v62  ;;  %v523_v31 = vsel %vm3471_vm14, %v521_v58, %v522_v54  ;;  %v723_v36 = vrot.slane %v721_v44, 4  ;;  %v722_v17 = vsel %vm3481_vm1, %v720_v32, %v721_v44  ;;  %v2457_v22 = vor.u32 %v2830_v26, %v2454_v3  ;;  %v3526_v47 = vld [vmem:[%s3745_s2] ss:$0 sm:$0xff]  ;;  %s3064_s2 = smov [#allocation8]  }
  0x92   :  { %699 = vst [vmem:[#allocation4 + $0x88] sm:$0xf] %v626_v10  ;;  %v633_v49 = vrot.slane %v3309_v63, 6  ;;  %v627_v1 = vrot.slane %v625_v37, 4  ;;  %v527_v37 = vrot.slane %v525_v6, 4  ;;  %v531_v44 = vrot.slane %v3098_v4, 6 }
  0x93   :  { %571 = vst [vmem:[#allocation4 + $0x80] sm:$0xf] %v523_v31  ;;  %v725_v48 = vsel %vm3481_vm1, %v723_v36, %v724_v8  ;;  %v727_v21 = vrot.slane %v3122_v15, 7  ;;  %v2779_v59 = vld [vmem:[#allocation4 + $0x1c] sm:$0xf]  ;;  %v726_v36 = vrot.slane %v724_v8, 4 }
  0x94   :  { %589 = vst [vmem:[#allocation4 + $0x60] sm:$0xf] %v523_v31  ;;  %v3528_v30 = vor.u32 %v634_v53, %v633_v49  ;;  %v2262_v6 = vld [vmem:[#allocation4 + $0x3c] sm:$0xf0]  ;;  %v638_v53 = vrot.slane %v3315_v35, 6  ;;  %v533_v35 = vrot.slane %v531_v44, 4 }
  0x95   :  { %772 = vst [vmem:[#allocation4 + $0x68] sm:$0xf] %v722_v17  ;;  %v730_v17 = vrot.slane %v3098_v4, 7  ;;  %s2198_s24 = sshll.u32 %s3064_s2, 4  ;;  %s2199_s24 = int_to_ptr.vmem [resolvable:$true] %s2198_s24 }
  0x96   :  { %773 = vst [vmem:[#allocation4 + $0x8c] sm:$0xf] %v725_v48  ;;  %v2778_v3 = vld [vmem:[#allocation4 + $0x14] sm:$0xf]  ;;  %v2260_v48 = vld [vmem:[#allocation4 + $0x18] sm:$0xf] }
  0x9a   :  { %1833 = vmatmul.bf16.gmra.mxu1 %v2421_v45  ;;  %1877 = vmatmul.bf16.gmra.mxu2 %v2425_v61  ;;  %v2469_v61 = vor.u32 %v2836_v50, %v2468_v14  ;;  %v2265_v14 = vor.u32 %v2779_v59, %v2262_v6  ;;  %v2268_v50 = vld [vmem:[#allocation4 + $0x20] sm:$0xf] }
  0x9b   :  { %1921 = vmatmul.bf16.gmra.mxu3 %v2429_v11  ;;  %v2835_v11 = vld [vmem:[#allocation4 + $0x1d8] sm:$0xf0] }
  0x9c   :  { %v2461_v23 = vor.u32 %v2835_v11, %v2460_v34  ;;  %v729_v34 = vrot.slane %v727_v21, 4  ;;  %v728_v11 = vsel %vm3481_vm1, %v726_v36, %v727_v21 }
  0x9d   :  { %774 = vst [vmem:[#allocation4 + $0xb0] sm:$0xf] %v728_v11 }
  0x9e   :  { %1965 = vmatmul.bf16.gmra.mxu0 %v2433_v51  ;;  %v629_v51 = vrot.slane %v3266_v16, 7  ;;  %v528_v16 = vrot.slane %v3122_v15, 6  ;;  %v2254_v15 = vld [vmem:[#allocation4 + $0x34] sm:$0xf0]  ;;  %v731_v8 = vsel %vm3481_vm1, %v729_v34, %v730_v17  ;;  %v2788_v34 = vld [vmem:[#allocation4 + $0x64] sm:$0xf] }
  0x9f   :  { %775 = vst [vmem:[#allocation4 + $0xd4] sm:$0xf] %v731_v8  ;;  %v2290_v8 = vld [vmem:[#allocation4 + $0x7c] sm:$0xf0] }
  0xa0   :  { %v630_v41 = vor.u32 %v629_v51, %v628_v60  ;;  %v530_v39 = vrot.slane %v528_v16, 4  ;;  %v529_v43 = vsel %vm3471_vm14, %v527_v37, %v528_v16  ;;  %v637_v37 = vrot.slane %v3528_v30, 4 }
  0xa1   :  { %573 = vst [vmem:[#allocation4 + $0xc8] sm:$0xf] %v529_v43 }
  0xa2   :  { %v632_v0 = vrot.slane %v630_v41, 4  ;;  %v631_v63 = vsel %vm3462_vm11, %v627_v1, %v630_v41  ;;  %v532_v26 = vsel %vm3471_vm14, %v530_v39, %v531_v44  ;;  %591 = vst [vmem:[#allocation4 + $0xa8] sm:$0xf] %v529_v43  ;;  %v639_v1 = vrot.slane %v3312_v52, 7 }
  0xa3   :  { %700 = vst [vmem:[#allocation4 + $0xac] sm:$0xf] %v631_v63  ;;  %v643_v63 = vrot.slane %v3349_v25, 6  ;;  %v534_v52 = vrot.slane %v3101_v5, 6  ;;  %v732_v25 = vrot.slane %v730_v17, 4  ;;  %v733_v44 = vrot.slane %v3101_v5, 7 }
  0xa4   :  { %v636_v29 = vsel %vm3462_vm11, %v632_v0, %v3528_v30  ;;  %574 = vst [vmem:[#allocation4 + $0xec] sm:$0xf] %v532_v26  ;;  %v537_v30 = vrot.slane %v3126_v19, 6  ;;  %v736_v17 = vrot.slane %v3126_v19, 7  ;;  %v2304_v19 = vld [vmem:[#allocation4 + $0x68] sm:$0xf] }
  0xa5   :  { %701 = vst [vmem:[#allocation4 + $0xd0] sm:$0xf] %v636_v29  ;;  %v644_v29 = vrot.slane %v3343_v57, 7  ;;  %v536_v57 = vrot.slane %v534_v52, 4  ;;  %v734_v5 = vsel %vm3481_vm1, %v732_v25, %v733_v44 }
  0xa6   :  { %592 = vst [vmem:[#allocation4 + $0xcc] sm:$0xf] %v532_v26 }
  0xa7   :  { %v3515_v45 = vpop.f32.mrf.mxu1  ;;  %v645_v39 = vor.u32 %v644_v29, %v643_v63  ;;  %v538_v11 = vsel %vm3471_vm14, %v536_v57, %v537_v30  ;;  %776 = vst [vmem:[#allocation4 + $0xf8] sm:$0xf] %v734_v5  ;;  %v648_v29 = vrot.slane %v3357_v42, 6  ;;  %v540_v42 = vrot.slane %v3128_v20, 6 }
  0xa8   :  { %594 = vst [vmem:[#allocation4 + $0x114] sm:$0xf] %v538_v11 }
  0xa9   :  { %v3519_v2 = vpop.f32.mrf.mxu0  ;;  %576 = vst [vmem:[#allocation4 + $0x134] sm:$0xf] %v538_v11  ;;  %v543_v11 = vrot.slane %v3112_v9, 6 }
  0xaa   :  { %1838 = vmatmul.bf16.gmra.mxu1 %v2457_v22  ;;  %1882 = vmatmul.bf16.gmra.mxu2 %v2461_v23  ;;  %v2784_v22 = vld [vmem:[#allocation4 + $0x40] sm:$0xf0] }
  0xab   :  { %1926 = vmatmul.bf16.gmra.mxu3 %v2465_v27  ;;  %v2783_v27 = vld [vmem:[#allocation4 + $0x38] sm:$0xf0]  ;;  %v2269_v41 = vor.u32 %v2784_v22, %v2268_v50  ;;  %v2792_v50 = vld [vmem:[#allocation4 + $0x80] sm:$0xf0] }
  0xac   :  { %v2261_v60 = vor.u32 %v2783_v27, %v2260_v48  ;;  %v735_v48 = vrot.slane %v733_v44, 4  ;;  %v2787_v27 = vld [vmem:[#allocation4 + $0x5c] sm:$0xf] }
  0xad   :  { %v1785_v54 = vpop.f32.mrf.mxu2 }
  0xae   :  { %1970 = vmatmul.bf16.gmra.mxu0 %v2469_v61  ;;  %v3534_v62 = vadd.f32 %v3526_v47, %v1785_v54  ;;  %v2257_v61 = vor.u32 %v2778_v3, %v2254_v15  ;;  %v640_v54 = vor.u32 %v639_v1, %v638_v53  ;;  %v535_v3 = vsel %vm3471_vm14, %v533_v35, %v534_v52  ;;  %v2298_v15 = vld [vmem:[#allocation4 + $0x84] sm:$0xf0] }
  0xaf   :  { %v3539_v10 = vpop.f32.mrf.mxu1  ;;  %575 = vst [vmem:[#allocation4 + $0x110] sm:$0xf] %v535_v3  ;;  %v737_v22 = vsel %vm3481_vm1, %v735_v48, %v736_v17  ;;  %v2293_v53 = vor.u32 %v2787_v27, %v2290_v8  ;;  %v647_v52 = vrot.slane %v645_v39, 4  ;;  %v739_v48 = vrot.slane %v3128_v20, 7 }
  0xb0   :  { %v1795_v58 = vpop.f32.mrf.mxu3  ;;  %v641_v59 = vsel %vm3462_vm11, %v637_v37, %v640_v54  ;;  %593 = vst [vmem:[#allocation4 + $0xf0] sm:$0xf] %v535_v3  ;;  %v649_v37 = vrot.slane %v3354_v28, 7  ;;  %v542_v3 = vrot.slane %v540_v42, 4 }
  0xb1   :  { %v3543_v31 = vpop.f32.mrf.mxu0  ;;  %v3546_v32 = vadd.f32 %v3526_v47, %v1795_v58  ;;  %v642_v58 = vrot.slane %v640_v54, 4  ;;  %702 = vst [vmem:[#allocation4 + $0xf4] sm:$0xf] %v641_v59  ;;  %v653_v59 = vrot.slane %v3387_v7, 6 }
  0xb2   :  { %777 = vst [vmem:[#allocation4 + $0x11c] sm:$0xf] %v737_v22  ;;  %v738_v22 = vrot.slane %v736_v17, 4 }
  0xb3   :  { %v646_v36 = vsel %vm3462_vm11, %v642_v58, %v645_v39 }
  0xb4   :  { %703 = vst [vmem:[#allocation4 + $0x118] sm:$0xf] %v646_v36  ;;  %v740_v20 = vsel %vm3481_vm1, %v738_v22, %v739_v48  ;;  %v545_v22 = vrot.slane %v543_v11, 4 }
  0xb5   :  { %v1787_v23 = vpop.f32.mrf.mxu2  ;;  %778 = vst [vmem:[#allocation4 + $0x140] sm:$0xf] %v740_v20 }
  0xb6   :  { %v3558_v4 = vadd.f32 %v3526_v47, %v1787_v23  ;;  %v2301_v23 = vor.u32 %v2788_v34, %v2298_v15  ;;  %v539_v34 = vrot.slane %v537_v30, 4  ;;  %v741_v30 = vrot.slane %v739_v48, 4  ;;  %v3765_v48 = vld [vmem:[#allocation18_spill] sm:$0xff] }
  0xb7   :  { %v3560_v51 = vpop.f32.mrf.mxu1 }
  0xb8   :  { %v1797_v49 = vpop.f32.mrf.mxu3 }
  0xb9   :  { %v3564_v0 = vpop.f32.mrf.mxu0  ;;  %v3567_v16 = vadd.f32 %v3526_v47, %v1797_v49 }
  0xba   :  { %1984 = vmatmul.bf16.vlgmr.msra.gmra.mxu1 %v2257_v61  ;;  %2028 = vmatmul.bf16.vlgmr.msra.gmra.mxu2 %v2261_v60  ;;  %v2793_v61 = vld [vmem:[#allocation4 + $0x88] sm:$0xf0] }
  0xbb   :  { %2072 = vmatmul.bf16.vlgmr.msra.gmra.mxu3 %v2265_v14  ;;  %v2296_v14 = vld [vmem:[#allocation4 + $0x60] sm:$0xf]  ;;  %v2305_v63 = vor.u32 %v2793_v61, %v2304_v19  ;;  %v742_v19 = vrot.slane %v3112_v9, 7  ;;  %v2796_v61 = vld [vmem:[#allocation4 + $0xa4] sm:$0xf] }
  0xbc   :  { %v2297_v1 = vor.u32 %v2792_v50, %v2296_v14  ;;  %v2797_v14 = vld [vmem:[#allocation4 + $0xac] sm:$0xf]  ;;  %v541_v50 = vsel %vm3471_vm14, %v539_v34, %v540_v42  ;;  %v2412_v12 = vld [vmem:[#allocation4 + $0x140] sm:$0xf] }
  0xbd   :  { %v1790_v21 = vpop.f32.mrf.mxu2  ;;  %577 = vst [vmem:[#allocation4 + $0x158] sm:$0xf] %v541_v50  ;;  %v743_v17 = vsel %vm3481_vm1, %v741_v30, %v742_v19  ;;  %v745_v30 = vrot.slane %v3765_v48, 7 }
  0xbe   :  { %2116 = vmatmul.bf16.vlgmr.msra.gmra.mxu0 %v2269_v41  ;;  %v3576_v43 = vadd.f32 %v3526_v47, %v1790_v21  ;;  %v1766_v41 = vadd.f32 %v3526_v47, %v3519_v2  ;;  %v650_v21 = vor.u32 %v649_v37, %v648_v29  ;;  %v654_v2 = vrot.slane %v3383_v40, 7  ;;  %595 = vst [vmem:[#allocation4 + $0x138] sm:$0xf] %v541_v50  ;;  %v2340_v29 = vld [vmem:[#allocation4 + $0xb0] sm:$0xf] }
  0xbf   :  { %v3580_v6 = vpop.f32.mrf.mxu1  ;;  %v1768_v40 = vadd.f32 %v3526_v47, %v3543_v31  ;;  %v544_v31 = vsel %vm3471_vm14, %v542_v3, %v543_v11  ;;  %v2802_v37 = vld [vmem:[#allocation4 + $0xd0] sm:$0xf0]  ;;  %779 = vst [vmem:[#allocation4 + $0x164] sm:$0xf] %v743_v17  ;;  %v2370_v17 = vld [vmem:[#allocation4 + $0x114] sm:$0xf0] }
  0xc0   :  { %v652_v36 = vrot.slane %v650_v21, 4  ;;  %v3604_v57 = vor.u32 %v654_v2, %v653_v59  ;;  %v651_v28 = vsel %vm3462_vm11, %v647_v52, %v650_v21  ;;  %596 = vst [vmem:[#allocation4 + $0x15c] sm:$0xf] %v544_v31  ;;  %v2341_v2 = vor.u32 %v2802_v37, %v2340_v29  ;;  %v2805_v29 = vld [vmem:[#allocation4 + $0xec] sm:$0xf] }
  0xc1   :  { %v3584_v26 = vpop.f32.mrf.mxu0  ;;  %704 = vst [vmem:[#allocation4 + $0x13c] sm:$0xf] %v651_v28  ;;  %v747_v11 = vrot.slane %v745_v30, 4  ;;  %v2362_v37 = vld [vmem:[#allocation4 + $0x10c] sm:$0xf0] }
  0xc2   :  { %v656_v39 = vsel %vm3462_vm11, %v652_v36, %v3604_v57  ;;  %578 = vst [vmem:[#allocation4 + $0x17c] sm:$0xf] %v544_v31  ;;  %v659_v36 = vrot.slane %v3392_v13, 7  ;;  %v549_v31 = vrot.slane %v3416_v24, 6 }
  0xc3   :  { %705 = vst [vmem:[#allocation4 + $0x160] sm:$0xf] %v656_v39 }
  0xc5   :  { %v1792_v60 = vpop.f32.mrf.mxu2 }
  0xc6   :  { %v3598_v49 = vadd.f32 %v3526_v47, %v1792_v60  ;;  %v2326_v60 = vld [vmem:[#allocation4 + $0xc4] sm:$0xf0] }
  0xc7   :  { %v1809_v54 = vpop.f32.mrf.mxu1  ;;  %v2329_v21 = vor.u32 %v2796_v61, %v2326_v60 }
  0xc8   :  { %v1810_v58 = vadd.f32 %v1809_v54, %v1766_v41  ;;  %v2801_v54 = vld [vmem:[#allocation4 + $0xc8] sm:$0xf0] }
  0xca   :  { %1989 = vmatmul.bf16.gmra.mxu1 %v2293_v53  ;;  %2033 = vmatmul.bf16.gmra.mxu2 %v2297_v1  ;;  %v2332_v1 = vld [vmem:[#allocation4 + $0xa8] sm:$0xf] }
  0xcb   :  { %2077 = vmatmul.bf16.gmra.mxu3 %v2301_v23  ;;  %v1941_v35 = vpop.f32.mrf.mxu0  ;;  %v2334_v23 = vld [vmem:[#allocation4 + $0xcc] sm:$0xf0] }
  0xcd   :  { %v1853_v44 = vpop.f32.mrf.mxu2 }
  0xce   :  { %v1897_v25 = vpop.f32.mrf.mxu3  ;;  %2121 = vmatmul.bf16.gmra.mxu0 %v2305_v63  ;;  %v1854_v7 = vadd.f32 %v1853_v44, %v1810_v58  ;;  %v2337_v63 = vor.u32 %v2797_v14, %v2334_v23  ;;  %v1771_v58 = vadd.f32 %v3526_v47, %v3564_v0  ;;  %v664_v0 = vrot.slane %v3428_v56, 7 }
  0xcf   :  { %v1811_v15 = vpop.f32.mrf.mxu1 }
  0xd0   :  { %v1898_v27 = vadd.f32 %v1897_v25, %v1854_v7  ;;  %v1812_v8 = vadd.f32 %v1811_v15, %v1768_v40  ;;  %v658_v25 = vrot.slane %v3395_v18, 6  ;;  %v3764_v40 = vshrl.u32 %v3416_v24, 16 }
  0xd1   :  { %v657_v18 = vrot.slane %v3604_v57, 4 }
  0xd2   :  { %v3623_v41 = vadd.f32 %v1941_v35, %v1898_v27  ;;  %v2333_v35 = vor.u32 %v2801_v54, %v2332_v1  ;;  %v660_v39 = vor.u32 %v659_v36, %v658_v25  ;;  %v663_v7 = vrot.slane %v3764_v40, 6  ;;  %v2811_v25 = vld [vmem:[#allocation4 + $0x118] sm:$0xf0]  ;;  %v99_v40 = vld [vmem:[#allocation2 + $0x40] sm:$0xf] }
  0xd3   :  { %v1943_v5 = vpop.f32.mrf.mxu0  ;;  %v546_v27 = vrot.slane %v3765_v48, 6  ;;  %v744_v54 = vrot.slane %v742_v19, 4  ;;  %v2368_v19 = vld [vmem:[#allocation4 + $0xf0] sm:$0xf]  ;;  %v674_v48 = vshrl.u32 %v99_v40, 16 }
  0xd4   :  { %v662_v15 = vrot.slane %v660_v39, 4  ;;  %v3637_v13 = vor.u32 %v664_v0, %v663_v7  ;;  %v661_v14 = vsel %vm3462_vm11, %v657_v18, %v660_v39 }
  0xd5   :  { %v1855_v9 = vpop.f32.mrf.mxu2  ;;  %706 = vst [vmem:[#allocation4 + $0x184] sm:$0xf] %v661_v14  ;;  %v548_v57 = vrot.slane %v546_v27, 4  ;;  %v547_v1 = vsel %vm3471_vm14, %v545_v22, %v546_v27 }
  0xd6   :  { %v1899_v53 = vpop.f32.mrf.mxu3  ;;  %v1856_v52 = vadd.f32 %v1855_v9, %v1812_v8  ;;  %v666_v56 = vsel %vm3462_vm11, %v662_v15, %v3637_v13  ;;  %579 = vst [vmem:[#allocation4 + $0x1a0] sm:$0xf] %v547_v1  ;;  %v746_v9 = vsel %vm3481_vm1, %v744_v54, %v745_v30  ;;  %v669_v15 = vrot.slane %v475_v46, 7 }
  0xd7   :  { %v1814_v59 = vpop.f32.mrf.mxu1  ;;  %707 = vst [vmem:[#allocation4 + $0x1a8] sm:$0xf] %v666_v56  ;;  %v677_v56 = vshll.u32 %v99_v40, 16  ;;  %v552_v46 = vrot.slane %v3419_v33, 6 }
  0xd8   :  { %v1900_v42 = vadd.f32 %v1899_v53, %v1856_v52  ;;  %v1815_v44 = vadd.f32 %v1814_v59, %v1771_v58  ;;  %v2806_v53 = vld [vmem:[#allocation4 + $0xf4] sm:$0xf]  ;;  %597 = vst [vmem:[#allocation4 + $0x180] sm:$0xf] %v547_v1  ;;  %v1778_v1 = vadd.f32 %v3526_v47, %v3539_v10 }
  0xd9   :  { %v2373_v59 = vor.u32 %v2806_v53, %v2370_v17  ;;  %780 = vst [vmem:[#allocation4 + $0x188] sm:$0xf] %v746_v9  ;;  %v551_v17 = vrot.slane %v549_v31, 4 }
  0xda   :  { %1994 = vmatmul.bf16.gmra.mxu1 %v2329_v21  ;;  %2038 = vmatmul.bf16.gmra.mxu2 %v2333_v35  ;;  %v3634_v34 = vadd.f32 %v1943_v5, %v1900_v42  ;;  %v1773_v5 = vadd.f32 %v3526_v47, %v3584_v26  ;;  %v550_v26 = vsel %vm3471_vm14, %v548_v57, %v549_v31  ;;  %v2810_v21 = vld [vmem:[#allocation4 + $0x110] sm:$0xf0] }
  0xdb   :  { %2082 = vmatmul.bf16.gmra.mxu3 %v2337_v63  ;;  %v1946_v28 = vpop.f32.mrf.mxu0  ;;  %v748_v63 = vrot.slane %v3416_v24, 7  ;;  %598 = vst [vmem:[#allocation4 + $0x1a4] sm:$0xf] %v550_v26  ;;  %v1776_v42 = vadd.f32 %v3526_v47, %v3515_v45  ;;  %v2369_v39 = vor.u32 %v2810_v21, %v2368_v19  ;;  %v2815_v19 = vld [vmem:[#allocation4 + $0x13c] sm:$0xf]  ;;  %v553_v10 = vsel %vm3471_vm14, %v551_v17, %v552_v46 }
  0xdc   :  { %580 = vst [vmem:[#allocation4 + $0x1c4] sm:$0xf] %v550_v26  ;;  %v583_v26 = vrot.slane %v552_v46, 4  ;;  %v2406_v21 = vld [vmem:[#allocation4 + $0x15c] sm:$0xf0] }
  0xdd   :  { %v1858_v8 = vpop.f32.mrf.mxu2  ;;  %v749_v35 = vsel %vm3481_vm1, %v747_v11, %v748_v63  ;;  %v584_v11 = vrot.slane %v99_v40, 6  ;;  %v750_v55 = vrot.slane %v748_v63, 4  ;;  %581 = vst [vmem:[#allocation4 + $0x1e8] sm:$0xf] %v553_v10  ;;  %v2409_v63 = vor.u32 %v2815_v19, %v2406_v21 }
  0xde   :  { %v1902_v3 = vpop.f32.mrf.mxu3  ;;  %2126 = vmatmul.bf16.gmra.mxu0 %v2341_v2  ;;  %v1859_v50 = vadd.f32 %v1858_v8, %v1815_v44  ;;  %v2376_v2 = vld [vmem:[#allocation4 + $0xf8] sm:$0xf]  ;;  %781 = vst [vmem:[#allocation4 + $0x1ac] sm:$0xf] %v749_v35  ;;  %v2442_v46 = vld [vmem:[#allocation4 + $0x1a4] sm:$0xf0] }
  0xdf   :  { %v1816_v23 = vpop.f32.mrf.mxu1  ;;  %v2377_v0 = vor.u32 %v2811_v25, %v2376_v2  ;;  %v585_v31 = vsel %vm3471_vm14, %v583_v26, %v584_v11  ;;  %v2814_v2 = vld [vmem:[#allocation4 + $0x134] sm:$0xf]  ;;  %v2398_v25 = vld [vmem:[#allocation4 + $0x154] sm:$0xf0]  ;;  %599 = vst [vmem:[#allocation4 + $0x1c8] sm:$0xf] %v553_v10 }
  0xe0   :  { %v1903_v61 = vadd.f32 %v1902_v3, %v1859_v50  ;;  %v1817_v60 = vadd.f32 %v1816_v23, %v1773_v5  ;;  %v3766_v3 = vshrl.u32 %v3419_v33, 16  ;;  %v676_v5 = vrot.slane %v674_v48, 6  ;;  %600 = vst [vmem:[#allocation4 + $0x1ec] sm:$0xf] %v585_v31  ;;  %v2448_v26 = vld [vmem:[#allocation4 + $0x188] sm:$0xf] }
  0xe1   :  { %v679_v50 = vrot.slane %v677_v56, 7  ;;  %v667_v23 = vrot.slane %v3637_v13, 4 }
  0xe2   :  { %v3658_v58 = vadd.f32 %v1946_v28, %v1903_v61  ;;  %v2365_v28 = vor.u32 %v2805_v29, %v2362_v37  ;;  %v668_v18 = vrot.slane %v3766_v3, 6  ;;  %v751_v29 = vrot.slane %v3419_v33, 7  ;;  %v2828_v17 = vld [vmem:[#allocation4 + $0x1a0] sm:$0xf0] }
  0xe3   :  { %v1948_v20 = vpop.f32.mrf.mxu0  ;;  %v680_v61 = vor.u32 %v679_v50, %v676_v5  ;;  %v2401_v3 = vor.u32 %v2814_v2, %v2398_v25  ;;  %v1783_v5 = vadd.f32 %v3526_v47, %v3580_v6 }
  0xe4   :  { %v670_v45 = vor.u32 %v669_v15, %v668_v18  ;;  %v753_v35 = vrot.slane %v751_v29, 4  ;;  %v752_v33 = vsel %vm3481_vm1, %v750_v55, %v751_v29 }
  0xe5   :  { %v1860_v36 = vpop.f32.mrf.mxu2  ;;  %782 = vst [vmem:[#allocation4 + $0x1d0] sm:$0xf] %v752_v33  ;;  %v2829_v11 = vld [vmem:[#allocation4 + $0x1a8] sm:$0xf0] }
  0xe6   :  { %v1904_v52 = vpop.f32.mrf.mxu3  ;;  %v1861_v44 = vadd.f32 %v1860_v36, %v1817_v60  ;;  %v672_v30 = vrot.slane %v670_v45, 4  ;;  %v671_v53 = vsel %vm3462_vm11, %v667_v23, %v670_v45 }
  0xe7   :  { %v1819_v7 = vpop.f32.mrf.mxu1  ;;  %708 = vst [vmem:[#allocation4 + $0x1cc] sm:$0xf] %v671_v53 }
  0xe8   :  { %v1905_v27 = vadd.f32 %v1904_v52, %v1861_v44  ;;  %v1820_v8 = vadd.f32 %v1819_v7, %v1776_v42  ;;  %v2404_v44 = vld [vmem:[#allocation4 + $0x138] sm:$0xf]  ;;  %v1781_v7 = vadd.f32 %v3526_v47, %v3560_v51 }
  0xea   :  { %1999 = vmatmul.bf16.gmra.mxu1 %v2365_v28  ;;  %2043 = vmatmul.bf16.gmra.mxu2 %v2369_v39  ;;  %v3670_v22 = vadd.f32 %v1948_v20, %v1905_v27  ;;  %v681_v20 = vsel %vm3462_vm11, %v672_v30, %v680_v61  ;;  %v2819_v28 = vld [vmem:[#allocation4 + $0x158] sm:$0xf0]  ;;  %v2820_v39 = vld [vmem:[#allocation4 + $0x160] sm:$0xf0] }
  0xeb   :  { %2087 = vmatmul.bf16.gmra.mxu3 %v2373_v59  ;;  %v1951_v14 = vpop.f32.mrf.mxu0  ;;  %709 = vst [vmem:[#allocation4 + $0x1f0] sm:$0xf] %v681_v20  ;;  %v754_v59 = vrot.slane %v99_v40, 7  ;;  %v2405_v18 = vor.u32 %v2819_v28, %v2404_v44  ;;  %v2413_v48 = vor.u32 %v2820_v39, %v2412_v12  ;;  %v2824_v61 = vld [vmem:[#allocation4 + $0x184] sm:$0xf] }
  0xec   :  { %v2440_v20 = vld [vmem:[#allocation4 + $0x180] sm:$0xf]  ;;  %v2470_v12 = vld [vmem:[#allocation4 + $0x1e4] sm:$0xf0] }
  0xed   :  { %v1863_v60 = vpop.f32.mrf.mxu2  ;;  %v755_v24 = vsel %vm3481_vm1, %v753_v35, %v754_v59  ;;  %v2441_v6 = vor.u32 %v2828_v17, %v2440_v20  ;;  %v2476_v39 = vld [vmem:[#allocation4 + $0x1c8] sm:$0xf] }
  0xee   :  { %v1907_v57 = vpop.f32.mrf.mxu3  ;;  %2131 = vmatmul.bf16.gmra.mxu0 %v2377_v0  ;;  %v1864_v54 = vadd.f32 %v1863_v60, %v1820_v8  ;;  %783 = vst [vmem:[#allocation4 + $0x1f4] sm:$0xf] %v755_v24  ;;  %v2823_v60 = vld [vmem:[#allocation4 + $0x17c] sm:$0xf]  ;;  %v2833_v44 = vld [vmem:[#allocation4 + $0x1cc] sm:$0xf] }
  0xef   :  { %v1821_v13 = vpop.f32.mrf.mxu1  ;;  %v2832_v24 = vld [vmem:[#allocation4 + $0x1c4] sm:$0xf] }
  0xf0   :  { %v1908_v37 = vadd.f32 %v1907_v57, %v1864_v54  ;;  %v1822_v9 = vadd.f32 %v1821_v13, %v1778_v1  ;;  %v2434_v54 = vld [vmem:[#allocation4 + $0x19c] sm:$0xf0]  ;;  %v2445_v13 = vor.u32 %v2824_v61, %v2442_v46 }
  0xf1   :  { %v2437_v47 = vor.u32 %v2823_v60, %v2434_v54 }
  0xf2   :  { %v3691_v36 = vadd.f32 %v1951_v14, %v1908_v37  ;;  %v2478_v28 = vld [vmem:[#allocation4 + $0x1ec] sm:$0xf0] }
  0xf3   :  { %v1953_v52 = vpop.f32.mrf.mxu0 }
  0xf5   :  { %v1865_v40 = vpop.f32.mrf.mxu2 }
  0xf6   :  { %v1909_v42 = vpop.f32.mrf.mxu3  ;;  %v1866_v0 = vadd.f32 %v1865_v40, %v1822_v9  ;;  %v2837_v40 = vld [vmem:[#allocation4 + $0x1e8] sm:$0xf0] }
  0xf7   :  { %v1824_v15 = vpop.f32.mrf.mxu1 }
  0xf8   :  { %v1910_v27 = vadd.f32 %v1909_v42, %v1866_v0  ;;  %v1825_v8 = vadd.f32 %v1824_v15, %v1781_v7  ;;  %v2481_v7 = vor.u32 %v2833_v44, %v2478_v28  ;;  %v2484_v0 = vld [vmem:[#allocation4 + $0x1d0] sm:$0xf] }
  0xfa   :  { %2004 = vmatmul.bf16.gmra.mxu1 %v2401_v3  ;;  %2048 = vmatmul.bf16.gmra.mxu2 %v2405_v18  ;;  %v3697_v38 = vadd.f32 %v1953_v52, %v1910_v27  ;;  %v2449_v52 = vor.u32 %v2829_v11, %v2448_v26  ;;  %v2838_v3 = vld [vmem:[#allocation4 + $0x1f0] sm:$0xf0]  ;;  %v2477_v27 = vor.u32 %v2837_v40, %v2476_v39 }
  0xfb   :  { %2092 = vmatmul.bf16.gmra.mxu3 %v2409_v63  ;;  %v1956_v14 = vpop.f32.mrf.mxu0 }
  0xfd   :  { %v1868_v45 = vpop.f32.mrf.mxu2 }
  0xfe   :  { %v1912_v56 = vpop.f32.mrf.mxu3  ;;  %2136 = vmatmul.bf16.gmra.mxu0 %v2413_v48  ;;  %v1869_v51 = vadd.f32 %v1868_v45, %v1825_v8  ;;  %v2473_v48 = vor.u32 %v2832_v24, %v2470_v12 }
  0xff   :  { %v1826_v50 = vpop.f32.mrf.mxu1 }
 0x100   :  { %v1913_v57 = vadd.f32 %v1912_v56, %v1869_v51  ;;  %v1827_v23 = vadd.f32 %v1826_v50, %v1783_v5 }
 0x102   :  { %v3701_v53 = vadd.f32 %v1956_v14, %v1913_v57  ;;  %v2485_v14 = vor.u32 %v2838_v3, %v2484_v0 }
 0x103   :  { %v1958_v30 = vpop.f32.mrf.mxu0 }
 0x105   :  { %v1870_v29 = vpop.f32.mrf.mxu2 }
 0x106   :  { %v1914_v1 = vpop.f32.mrf.mxu3  ;;  %v1871_v37 = vadd.f32 %v1870_v29, %v1827_v23 }
 0x107   :  { %v1829_v9 = vpop.f32.mrf.mxu1 }
 0x108   :  { %v1915_v19 = vadd.f32 %v1914_v1, %v1871_v37  ;;  %v1830_v10 = vadd.f32 %v1829_v9, %v3534_v62 }
 0x10a   :  { %2009 = vmatmul.bf16.gmra.mxu1 %v2437_v47  ;;  %2053 = vmatmul.bf16.gmra.mxu2 %v2441_v6  ;;  %v3704_v21 = vadd.f32 %v1958_v30, %v1915_v19 }
 0x10b   :  { %2097 = vmatmul.bf16.gmra.mxu3 %v2445_v13  ;;  %v1961_v55 = vpop.f32.mrf.mxu0 }
 0x10d   :  { %v1873_v35 = vpop.f32.mrf.mxu2 }
 0x10e   :  { %v1917_v31 = vpop.f32.mrf.mxu3  ;;  %2141 = vmatmul.bf16.gmra.mxu0 %v2449_v52  ;;  %v1874_v59 = vadd.f32 %v1873_v35, %v1830_v10 }
 0x10f   :  { %v1831_v2 = vpop.f32.mrf.mxu1 }
 0x110   :  { %v1918_v25 = vadd.f32 %v1917_v31, %v1874_v59  ;;  %v1832_v33 = vadd.f32 %v1831_v2, %v3558_v4 }
 0x112   :  { %v3707_v63 = vadd.f32 %v1961_v55, %v1918_v25 }
 0x113   :  { %v1963_v42 = vpop.f32.mrf.mxu0 }
 0x115   :  { %v1875_v18 = vpop.f32.mrf.mxu2 }
 0x116   :  { %v1919_v62 = vpop.f32.mrf.mxu3  ;;  %v1876_v15 = vadd.f32 %v1875_v18, %v1832_v33 }
 0x117   :  { %v1834_v8 = vpop.f32.mrf.mxu1 }
 0x118   :  { %v1920_v4 = vadd.f32 %v1919_v62, %v1876_v15  ;;  %v1835_v56 = vadd.f32 %v1834_v8, %v3576_v43 }
 0x11a   :  { %2014 = vmatmul.bf16.gmra.mxu1 %v2473_v48  ;;  %2058 = vmatmul.bf16.gmra.mxu2 %v2477_v27  ;;  %v3710_v5 = vadd.f32 %v1963_v42, %v1920_v4 }
 0x11b   :  { %2102 = vmatmul.bf16.gmra.mxu3 %v2481_v7  ;;  %v1966_v45 = vpop.f32.mrf.mxu0 }
 0x11d   :  { %v1878_v50 = vpop.f32.mrf.mxu2 }
 0x11e   :  { %v1922_v51 = vpop.f32.mrf.mxu3  ;;  %2146 = vmatmul.bf16.gmra.mxu0 %v2485_v14  ;;  %v1879_v57 = vadd.f32 %v1878_v50, %v1835_v56 }
 0x11f   :  { %v1836_v23 = vpop.f32.mrf.mxu1 }
 0x120   :  { %v1923_v30 = vadd.f32 %v1922_v51, %v1879_v57  ;;  %v1837_v61 = vadd.f32 %v1836_v23, %v3598_v49 }
 0x122   :  { %v3713_v60 = vadd.f32 %v1966_v45, %v1923_v30 }
 0x123   :  { %v1968_v46 = vpop.f32.mrf.mxu0 }
 0x125   :  { %v1880_v54 = vpop.f32.mrf.mxu2 }
 0x126   :  { %v1924_v1 = vpop.f32.mrf.mxu3  ;;  %v1881_v43 = vadd.f32 %v1880_v54, %v1837_v61 }
 0x127   :  { %v1839_v20 = vpop.f32.mrf.mxu1 }
 0x128   :  { %v1925_v17 = vadd.f32 %v1924_v1, %v1881_v43  ;;  %v1840_v13 = vadd.f32 %v1839_v20, %v3546_v32 }
 0x12a   :  { %v3716_v11 = vadd.f32 %v1968_v46, %v1925_v17 }
 0x12b   :  { %v1971_v26 = vpop.f32.mrf.mxu0 }
 0x12d   :  { %v1883_v37 = vpop.f32.mrf.mxu2 }
 0x12e   :  { %v1927_v29 = vpop.f32.mrf.mxu3  ;;  %v1884_v47 = vadd.f32 %v1883_v37, %v1840_v13 }
 0x12f   :  { %v1841_v6 = vpop.f32.mrf.mxu1 }
 0x130   :  { %v1928_v9 = vadd.f32 %v1927_v29, %v1884_v47  ;;  %v1842_v49 = vadd.f32 %v1841_v6, %v3567_v16 }
 0x132   :  { %v3719_v19 = vadd.f32 %v1971_v26, %v1928_v9 }
 0x133   :  { %v1973_v52 = vpop.f32.mrf.mxu0 }
 0x135   :  { %v1885_v55 = vpop.f32.mrf.mxu2 }
 0x136   :  { %v1929_v10 = vpop.f32.mrf.mxu3  ;;  %v1886_v31 = vadd.f32 %v1885_v55, %v1842_v49 }
 0x137   :  { %v1985_v35 = vpop.f32.mrf.mxu1 }
 0x138   :  { %v1930_v59 = vadd.f32 %v1929_v10, %v1886_v31  ;;  %v1986_v42 = vadd.f32 %v1985_v35, %v3623_v41 }
 0x13a   :  { %v3721_v32 = vadd.f32 %v1973_v52, %v1930_v59 }
 0x13b   :  { %v2117_v2 = vpop.f32.mrf.mxu0 }
 0x13d   :  { %v2029_v33 = vpop.f32.mrf.mxu2 }
 0x13e   :  { %v2073_v25 = vpop.f32.mrf.mxu3  ;;  %v2030_v28 = vadd.f32 %v2029_v33, %v1986_v42 }
 0x13f   :  { %v1987_v44 = vpop.f32.mrf.mxu1 }
 0x140   :  { %v2074_v16 = vadd.f32 %v2073_v25, %v2030_v28  ;;  %v1988_v12 = vadd.f32 %v1987_v44, %v3634_v34 }
 0x142   :  { %v2118_v0 = vadd.f32 %v2117_v2, %v2074_v16 }
 0x143   :  { %v2119_v24 = vpop.f32.mrf.mxu0 }
 0x144   :  { %v2152_v27 = vmax.f32 %v2118_v0, 0.0 }
 0x145   :  { %v2031_v39 = vpop.f32.mrf.mxu2 }
 0x146   :  { %v2075_v62 = vpop.f32.mrf.mxu3  ;;  %v2032_v40 = vadd.f32 %v2031_v39, %v1988_v12 }
 0x147   :  { %v1990_v7 = vpop.f32.mrf.mxu1 }
 0x148   :  { %v2076_v3 = vadd.f32 %v2075_v62, %v2032_v40  ;;  %v1991_v41 = vadd.f32 %v1990_v7, %v3658_v58 }
 0x14a   :  { %v2120_v15 = vadd.f32 %v2119_v24, %v2076_v3 }
 0x14b   :  { %v2122_v18 = vpop.f32.mrf.mxu0 }
 0x14c   :  { %v2153_v8 = vmax.f32 %v2120_v15, 0.0 }
 0x14d   :  { %v2034_v14 = vpop.f32.mrf.mxu2 }
 0x14e   :  { %v2078_v48 = vpop.f32.mrf.mxu3  ;;  %v2914_v4 = vpack.c.bf16 %v2153_v8, %v2152_v27  ;;  %v2035_v45 = vadd.f32 %v2034_v14, %v1991_v41 }
 0x14f   :  { %v1992_v56 = vpop.f32.mrf.mxu1 }
 0x150   :  { %2915 = vst [vmem:[#allocation8] sm:$0xff] %v2914_v4   ;;  %v2079_v34 = vadd.f32 %v2078_v48, %v2035_v45  ;;  %v1993_v57 = vadd.f32 %v1992_v56, %v3670_v22 }
 0x152   :  { %v2123_v46 = vadd.f32 %v2122_v18, %v2079_v34 }
 0x153   :  { %v2124_v51 = vpop.f32.mrf.mxu0 }
 0x154   :  { %v2154_v17 = vmax.f32 %v2123_v46, 0.0 }
 0x155   :  { %v2036_v23 = vpop.f32.mrf.mxu2 }
 0x156   :  { %v2080_v50 = vpop.f32.mrf.mxu3  ;;  %v2037_v30 = vadd.f32 %v2036_v23, %v1993_v57 }
 0x157   :  { %v1995_v61 = vpop.f32.mrf.mxu1 }
 0x158   :  { %v2081_v1 = vadd.f32 %v2080_v50, %v2037_v30  ;;  %v1996_v29 = vadd.f32 %v1995_v61, %v3691_v36 }
 0x15a   :  { %v2125_v43 = vadd.f32 %v2124_v51, %v2081_v1 }
 0x15b   :  { %v2127_v54 = vpop.f32.mrf.mxu0 }
 0x15c   :  { %v2155_v13 = vmax.f32 %v2125_v43, 0.0 }
 0x15d   :  { %v2039_v26 = vpop.f32.mrf.mxu2 }
 0x15e   :  { %v2083_v20 = vpop.f32.mrf.mxu3  ;;  %v2919_v58 = vpack.c.bf16 %v2155_v13, %v2154_v17  ;;  %v2040_v47 = vadd.f32 %v2039_v26, %v1996_v29 }
 0x15f   :  { %v1997_v37 = vpop.f32.mrf.mxu1 }
 0x160   :  { %2946 = vst [vmem:[#allocation8 + $0x8] sm:$0xff] %v2919_v58   ;;  %v2084_v22 = vadd.f32 %v2083_v20, %v2040_v47  ;;  %v1998_v49 = vadd.f32 %v1997_v37, %v3697_v38 }
 0x162   :  { %v2128_v31 = vadd.f32 %v2127_v54, %v2084_v22 }
 0x163   :  { %v2129_v6 = vpop.f32.mrf.mxu0 }
 0x164   :  { %v2156_v33 = vmax.f32 %v2128_v31, 0.0 }
 0x165   :  { %v2041_v52 = vpop.f32.mrf.mxu2 }
 0x166   :  { %v2085_v9 = vpop.f32.mrf.mxu3  ;;  %v2042_v10 = vadd.f32 %v2041_v52, %v1998_v49 }
 0x167   :  { %v2000_v55 = vpop.f32.mrf.mxu1 }
 0x168   :  { %v2086_v35 = vadd.f32 %v2085_v9, %v2042_v10  ;;  %v2001_v28 = vadd.f32 %v2000_v55, %v3701_v53 }
 0x16a   :  { %v2130_v2 = vadd.f32 %v2129_v6, %v2086_v35 }
 0x16b   :  { %v2132_v59 = vpop.f32.mrf.mxu0 }
 0x16c   :  { %v2157_v42 = vmax.f32 %v2130_v2, 0.0 }
 0x16d   :  { %v2044_v44 = vpop.f32.mrf.mxu2 }
 0x16e   :  { %v2088_v25 = vpop.f32.mrf.mxu3  ;;  %v2924_v36 = vpack.c.bf16 %v2157_v42, %v2156_v33  ;;  %v2045_v62 = vadd.f32 %v2044_v44, %v2001_v28 }
 0x16f   :  { %v2002_v24 = vpop.f32.mrf.mxu1 }
 0x170   :  { %2947 = vst [vmem:[#allocation8 + $0x10] sm:$0xff] %v2924_v36   ;;  %v2089_v38 = vadd.f32 %v2088_v25, %v2045_v62  ;;  %v2003_v39 = vadd.f32 %v2002_v24, %v3704_v21 }
 0x172   :  { %v2133_v3 = vadd.f32 %v2132_v59, %v2089_v38 }
 0x173   :  { %v2134_v16 = vpop.f32.mrf.mxu0 }
 0x174   :  { %v2158_v8 = vmax.f32 %v2133_v3, 0.0 }
 0x175   :  { %v2046_v40 = vpop.f32.mrf.mxu2 }
 0x176   :  { %v2090_v12 = vpop.f32.mrf.mxu3  ;;  %v2047_v7 = vadd.f32 %v2046_v40, %v2003_v39 }
 0x177   :  { %v2005_v0 = vpop.f32.mrf.mxu1 }
 0x178   :  { %v2091_v18 = vadd.f32 %v2090_v12, %v2047_v7  ;;  %v2006_v41 = vadd.f32 %v2005_v0, %v3707_v63 }
 0x17a   :  { %v2135_v48 = vadd.f32 %v2134_v16, %v2091_v18 }
 0x17b   :  { %v2137_v15 = vpop.f32.mrf.mxu0 }
 0x17c   :  { %v2159_v14 = vmax.f32 %v2135_v48, 0.0 }
 0x17d   :  { %v2049_v4 = vpop.f32.mrf.mxu2 }
 0x17e   :  { %v2093_v27 = vpop.f32.mrf.mxu3  ;;  %v2929_v53 = vpack.c.bf16 %v2159_v14, %v2158_v8  ;;  %v2050_v45 = vadd.f32 %v2049_v4, %v2006_v41 }
 0x17f   :  { %v2007_v56 = vpop.f32.mrf.mxu1 }
 0x180   :  { %2948 = vst [vmem:[#allocation8 + $0x18] sm:$0xff] %v2929_v53   ;;  %v2094_v21 = vadd.f32 %v2093_v27, %v2050_v45  ;;  %v2008_v34 = vadd.f32 %v2007_v56, %v3710_v5 }
 0x182   :  { %v2138_v61 = vadd.f32 %v2137_v15, %v2094_v21 }
 0x183   :  { %v2139_v51 = vpop.f32.mrf.mxu0 }
 0x184   :  { %v2160_v20 = vmax.f32 %v2138_v61, 0.0 }
 0x185   :  { %v2051_v57 = vpop.f32.mrf.mxu2 }
 0x186   :  { %v2095_v50 = vpop.f32.mrf.mxu3  ;;  %v2052_v23 = vadd.f32 %v2051_v57, %v2008_v34 }
 0x187   :  { %v2010_v30 = vpop.f32.mrf.mxu1 }
 0x188   :  { %v2096_v46 = vadd.f32 %v2095_v50, %v2052_v23  ;;  %v2011_v26 = vadd.f32 %v2010_v30, %v3713_v60 }
 0x18a   :  { %v2140_v1 = vadd.f32 %v2139_v51, %v2096_v46 }
 0x18b   :  { %v2142_v54 = vpop.f32.mrf.mxu0 }
 0x18c   :  { %v2161_v17 = vmax.f32 %v2140_v1, 0.0 }
 0x18d   :  { %v2054_v13 = vpop.f32.mrf.mxu2 }
 0x18e   :  { %v2098_v43 = vpop.f32.mrf.mxu3  ;;  %v2934_v63 = vpack.c.bf16 %v2161_v17, %v2160_v20  ;;  %v2055_v29 = vadd.f32 %v2054_v13, %v2011_v26 }
 0x18f   :  { %v2012_v58 = vpop.f32.mrf.mxu1 }
 0x190   :  { %2949 = vst [vmem:[#allocation8 + $0x20] sm:$0xff] %v2934_v63   ;;  %v2099_v47 = vadd.f32 %v2098_v43, %v2055_v29  ;;  %v2013_v5 = vadd.f32 %v2012_v58, %v3716_v11 }
 0x192   :  { %v2143_v52 = vadd.f32 %v2142_v54, %v2099_v47 }
 0x193   :  { %v2144_v6 = vpop.f32.mrf.mxu0 }
 0x194   :  { %v2162_v31 = vmax.f32 %v2143_v52, 0.0 }
 0x195   :  { %v2056_v9 = vpop.f32.mrf.mxu2 }
 0x196   :  { %v2100_v37 = vpop.f32.mrf.mxu3  ;;  %v2057_v22 = vadd.f32 %v2056_v9, %v2013_v5 }
 0x197   :  { %v2015_v49 = vpop.f32.mrf.mxu1 }
 0x198   :  { %v2101_v10 = vadd.f32 %v2100_v37, %v2057_v22  ;;  %v2016_v60 = vadd.f32 %v2015_v49, %v3719_v19 }
 0x19a   :  { %v2145_v55 = vadd.f32 %v2144_v6, %v2101_v10 }
 0x19b   :  { %v2147_v33 = vpop.f32.mrf.mxu0 }
 0x19c   :  { %v2163_v35 = vmax.f32 %v2145_v55, 0.0 }
 0x19d   :  { %v2059_v2 = vpop.f32.mrf.mxu2 }
 0x19e   :  { %v2103_v59 = vpop.f32.mrf.mxu3  ;;  %v2939_v25 = vpack.c.bf16 %v2163_v35, %v2162_v31  ;;  %v2060_v42 = vadd.f32 %v2059_v2, %v2016_v60 }
 0x19f   :  { %v2017_v44 = vpop.f32.mrf.mxu1 }
 0x1a0   :  { %2950 = vst [vmem:[#allocation8 + $0x28] sm:$0xff] %v2939_v25   ;;  %v2104_v36 = vadd.f32 %v2103_v59, %v2060_v42  ;;  %v2018_v11 = vadd.f32 %v2017_v44, %v3721_v32 }
 0x1a2   :  { %v2148_v16 = vadd.f32 %v2147_v33, %v2104_v36 }
 0x1a3   :  { %v2149_v38 = vpop.f32.mrf.mxu0 }
 0x1a4   :  { %v2164_v19 = vmax.f32 %v2148_v16, 0.0 }
 0x1a5   :  { %v2061_v28 = vpop.f32.mrf.mxu2 }
 0x1a6   :  { %v2062_v24 = vadd.f32 %v2061_v28, %v2018_v11  ;;  %v2105_v62 = vpop.f32.mrf.mxu3 }
 0x1a8   :  { %v2106_v12 = vadd.f32 %v2105_v62, %v2062_v24 }
 0x1aa   :  { %v2150_v39 = vadd.f32 %v2149_v38, %v2106_v12 }
 0x1ac   :  { %v2165_v40 = vmax.f32 %v2150_v39, 0.0 }
 0x1ae   :  { %v2944_v7 = vpack.c.bf16 %v2165_v40, %v2164_v19 }
 0x1b0   :  { %2951 = vst [vmem:[#allocation8 + $0x30] sm:$0xff] %v2944_v7  }
 0x1b1   :  { %2206 = dma.vmem_to_hbm [thread:$0]  %s2199_s24, 896, %s2201_s27, [#allocation7], %s3061_s17, %s3061_s17, %s3062_s18  }
 0x1b2   :  { %3058 = dma.done.wait [#allocation7], 896  }
 0x1b3   :  { %3059 = vsyncadd [#allocation7], 4294966400 }
 0x1b4   :  { %2211 = vsyncpa [#allocation6], 1 }
 0x1b5   :  { %2212 = vsyncpa [#allocation7], 1 }
 0x1b6   :  { %2213 = vsyncmov [#allocation3] }
 0x1b9   :  { %s2214_s28 = vpop.sfrf %2213 }
 0x1ba   :  { %p2774_p0 = scmp.ne.s32.totalorder %s2214_s28, 0 }
 0x1bc   :  { %2218 = shalt.err (%p2774_p0)  }
 0x1bd   :  { %2220 = vsyncmov [#allocation3 + $0x1] }
 0x1c0   :  { %s2221_s3 = vpop.sfrf %2220 }
 0x1c1   :  { %p2775_p1 = scmp.ne.s32.totalorder %s2221_s3, 0 }
 0x1c3   :  { %2225 = shalt.err (%p2775_p1)  }

</bundles_post_ra>
